<compile_context>
chip_gen: v7x
topology: tpu7x:2x2x1
jax: 0.10.0
libtpu: 0.0.40
codegen_flags: <defaults>
</compile_context>

<pallas_src>
import jax
import jax.numpy as jnp
import numpy as np
from jax import lax
from jax.experimental import pallas as pl
from jax.experimental.pallas import tpu as pltpu  # noqa: F401  (TPU backend)


def _round_up(n, m):
    return ((n + m - 1) // m) * m


def _make_decoder_kernel(B, T, enc, dec, out_feats, offsets, slab_width):
    TE = T * enc
    n_steps = T - 1

    def kernel(e_ref, y_ref, slab_ref, out_ref):
        def blk(name, r, c):
            o = offsets[name]
            return slab_ref[o:o + r, :c]

        E_flat = e_ref[...]                                        # (B, T*enc)

        # ---------- static slab slices (loads hoisted above the loop) ----------
        A12 = blk("a12_rep", 2 * dec, TE)        # (2*dec, T*enc), A1;A2 tiled over T
        b1r = blk("b1_rep", 1, TE)               # (1, T*enc)
        A3bd = blk("a3_bd", TE, TE)              # blockdiag(A3), (T*enc, T*enc)
        W2selT = blk("w2sel_t", T, TE)           # score selector with w2 baked in
        Srep = blk("s_rep", T, TE)               # beta -> beta_rep selector
        RsumT = blk("r_sum_t", enc, TE)          # sum-over-T selector
        Whh = blk("whh", dec, 4 * dec)           # gates [i,f,o,g]
        Wih = blk("wih", out_feats, 4 * dec)
        blr = blk("bl", 1, 4 * dec)
        fcw_ctx = blk("fcw_ctx", out_feats, enc)
        fcw_y = blk("fcw_y", out_feats, out_feats)
        fcb = blk("fcb", 1, out_feats)
        fcf_h = blk("fcf_h", out_feats, dec)
        fcf_ctx = blk("fcf_ctx", out_feats, enc)
        fcfb = blk("fcfb", 1, out_feats)

        # ---------- loop-invariant work ----------
        # enc_part = E @ A3, once, already in the flat lane-dense layout.
        enc_part = jnp.dot(E_flat, A3bd, preferred_element_type=jnp.float32)

        def rowdot(x, w_rows):
            # x: (B, K) contracted against w_rows: (N, K) -> (B, N).
            # N==1 (out_feats==1) stays on the VPU (mul + lane reduce).
            if w_rows.shape[0] == 1:
                return jnp.sum(x * w_rows, axis=-1, keepdims=True)
            return lax.dot_general(x, w_rows, (((1,), (1,)), ((), ())),
                                   preferred_element_type=jnp.float32)

        def step(t, carry):
            h, c, _ctx = carry

            # ---- input attention over T encoder steps (flat, lane-dense) ----
            hcat = jnp.concatenate([h, c], axis=-1)                # (B, 2*dec)
            hc_rep = jnp.dot(hcat, A12,
                             preferred_element_type=jnp.float32) + b1r   # (B, T*enc)
            z = jnp.tanh(hc_rep + enc_part)                        # (B, T*enc) EUP
            # b2 omitted: a uniform constant cancels in the softmax.
            score = lax.dot_general(z, W2selT, (((1,), (1,)), ((), ())),
                                    preferred_element_type=jnp.float32)  # (B, T)
            m = jnp.max(score, axis=-1, keepdims=True)
            ex = jnp.exp(score - m)
            beta = ex * pl.reciprocal(jnp.sum(ex, axis=-1, keepdims=True),
                                      approx=True)                 # (B, T)
            beta_rep = jnp.dot(beta, Srep,
                               preferred_element_type=jnp.float32)  # (B, T*enc)
            ctx = lax.dot_general(beta_rep * E_flat, RsumT,
                                  (((1,), (1,)), ((), ())),
                                  preferred_element_type=jnp.float32)    # (B, enc)

            # ---- y_tilde = fc([context, y_history[:, t]]) (split weights) ----
            y_t = y_ref[t]                                          # (B, out)
            if out_feats == 1:
                y_fc = y_t * fcw_y
            else:
                y_fc = jnp.dot(y_t, fcw_y, preferred_element_type=jnp.float32)
            y_tilde = rowdot(ctx, fcw_ctx) + y_fc + fcb             # (B, out)

            # ---- one fused LSTM gate matmul; gates pre-permuted [i,f,o,g] ----
            pre = jnp.dot(h, Whh, preferred_element_type=jnp.float32)
            if out_feats == 1:
                pre = pre + y_tilde * Wih                           # (B,1)*(1,4*dec)
            else:
                pre = pre + jnp.dot(y_tilde, Wih,
                                    preferred_element_type=jnp.float32)
            pre = pre + blr                                         # (B, 4*dec)
            sig = jax.nn.sigmoid(pre[:, :3 * dec])                  # i | f | o
            g_g = jnp.tanh(pre[:, 3 * dec:])
            i_g = sig[:, :dec]
            f_g = sig[:, dec:2 * dec]
            o_g = sig[:, 2 * dec:3 * dec]
            c_new = f_g * c + i_g * g_g
            h_new = o_g * jnp.tanh(c_new)
            return (h_new, c_new, ctx)

        h0 = jnp.zeros((B, dec), jnp.float32)
        c0 = jnp.zeros((B, dec), jnp.float32)
        ctx0 = jnp.zeros((B, enc), jnp.float32)
        # TODO(synk): switch to a partial unroll (e.g. 4) for large T.
        h, c, ctx = lax.fori_loop(0, n_steps, step, (h0, c0, ctx0), unroll=True)

        # ---- fc_final([hidden, context]) (split weights, no concat) ----
        out = rowdot(h, fcf_h) + rowdot(ctx, fcf_ctx) + fcfb
        out_ref[...] = out.astype(out_ref.dtype)

    return kernel


def decoder_forward(input_encoded, y_history, params):
    B, T, enc = input_encoded.shape
    dec = params["whh"].shape[0]
    out_feats = params["fc_w"].shape[1]
    TE = T * enc
    f32 = jnp.float32

    # ----- attention weights, rewritten for the flat (B, T*enc) layout -----
    w1 = params["w1"].astype(f32)
    A12 = w1[:2 * dec]                                     # [A1; A2] (2*dec, enc)
    A3 = w1[2 * dec:]                                      # (enc, enc)
    w2 = params["w2"].reshape(1, enc).astype(f32)
    b1 = params["b1"].reshape(1, enc).astype(f32)
    # b2 dropped: softmax-invariant uniform constant.

    eyeT = jnp.eye(T, dtype=f32)
    a12_rep = jnp.tile(A12, (1, T))                        # (2*dec, T*enc)
    b1_rep = jnp.tile(b1, (1, T))                          # (1, T*enc)
    a3_bd = jnp.kron(eyeT, A3)                             # (T*enc, T*enc)
    w2sel_t = jnp.kron(eyeT, w2)                           # (T, T*enc)
    s_rep = jnp.kron(eyeT, jnp.ones((1, enc), f32))        # (T, T*enc)
    r_sum_t = jnp.kron(jnp.ones((1, T), f32), jnp.eye(enc, dtype=f32))  # (enc, T*enc)

    # ----- LSTM weights: gate blocks permuted [i,f,g,o] -> [i,f,o,g] -----
    def perm_gates(w):
        return jnp.concatenate(
            [w[..., :2 * dec], w[..., 3 * dec:4 * dec], w[..., 2 * dec:3 * dec]],
            axis=-1).astype(f32)

    whh_p = perm_gates(params["whh"])                      # (dec, 4*dec)
    wih_p = perm_gates(params["wih"])                      # (out, 4*dec)
    bl_p = perm_gates(params["bl"].reshape(1, 4 * dec))    # (1, 4*dec)

    # ----- fc / fc_final split along the concat axis -----
    fc_w = params["fc_w"].astype(f32)
    fcf_w = params["fcf_w"].astype(f32)
    entries = [
        ("a12_rep", a12_rep),
        ("b1_rep", b1_rep),
        ("a3_bd", a3_bd),
        ("w2sel_t", w2sel_t),
        ("s_rep", s_rep),
        ("r_sum_t", r_sum_t),
        ("whh", whh_p),
        ("wih", wih_p),
        ("bl", bl_p),
        ("fcw_ctx", fc_w[:enc].T),                         # (out, enc)
        ("fcw_y", fc_w[enc:]),                             # (out, out)
        ("fcb", params["fc_b"].reshape(1, out_feats).astype(f32)),
        ("fcf_h", fcf_w[:dec].T),                          # (out, dec)
        ("fcf_ctx", fcf_w[dec:].T),                        # (out, enc)
        ("fcfb", params["fcf_b"].reshape(1, out_feats).astype(f32)),
    ]

    # ----- pack everything into one contiguous f32 slab (one prologue DMA) -----
    slab_width = _round_up(max(int(a.shape[1]) for _, a in entries), 128)
    offsets, blocks, off = {}, [], 0
    for name, a in entries:
        r, c = int(a.shape[0]), int(a.shape[1])
        offsets[name] = off
        pr = _round_up(r, 8)                               # sublane-aligned offsets
        block = jnp.zeros((pr, slab_width), f32).at[:r, :c].set(a)
        blocks.append(block)
        off += pr
    slab = jnp.concatenate(blocks, axis=0)

    e_flat = input_encoded.reshape(B, TE).astype(f32)      # free row-major reshape
    y_tm = jnp.transpose(y_history.astype(f32), (1, 0, 2))  # (T-1, B, out)

    kernel = _make_decoder_kernel(B, T, enc, dec, out_feats, offsets, slab_width)
    # TODO(synk): at larger B, add grid=(B//TB,) with BlockSpecs over the batch
    # dim and dimension_semantics=("parallel",) to shard across v7x TensorCores.
    return pl.pallas_call(
        kernel,
        out_shape=jax.ShapeDtypeStruct((B, out_feats), jnp.float32),
    )(e_flat, y_tm, slab)


def decoder_ref(E, Y, p):
    """Pure-JAX reference mirroring the PyTorch forward exactly."""
    B, T, enc = E.shape
    dec = p["whh"].shape[0]
    h = jnp.zeros((B, dec), jnp.float32)
    c = jnp.zeros((B, dec), jnp.float32)
    ctx = jnp.zeros((B, enc), jnp.float32)
    A1, A2, A3 = p["w1"][:dec], p["w1"][dec:2 * dec], p["w1"][2 * dec:]
    for t in range(T - 1):
        hc = h @ A1 + c @ A2 + p["b1"]
        ep = jnp.einsum("bte,eh->bth", E, A3)
        z = jnp.tanh(hc[:, None, :] + ep)
        score = jnp.sum(z * p["w2"][None, :, :], axis=-1) + p["b2"]
        beta = jax.nn.softmax(score, axis=1)
        ctx = jnp.einsum("bt,bte->be", beta, E)
        y_tilde = jnp.concatenate([ctx, Y[:, t, :]], axis=1) @ p["fc_w"] + p["fc_b"]
        gates = y_tilde @ p["wih"] + h @ p["whh"] + p["bl"]
        i_g = jax.nn.sigmoid(gates[:, :dec])
        f_g = jax.nn.sigmoid(gates[:, dec:2 * dec])
        g_g = jnp.tanh(gates[:, 2 * dec:3 * dec])
        o_g = jax.nn.sigmoid(gates[:, 3 * dec:])
        c = f_g * c + i_g * g_g
        h = o_g * jnp.tanh(c)
    return jnp.concatenate([h, ctx], axis=1) @ p["fcf_w"] + p["fcf_b"]


if __name__ == "__main__":
    B, T, ENC, DEC, OUT = 8, 8, 32, 32, 1
    key = jax.random.PRNGKey(0)
    ks = jax.random.split(key, 13)
    s = 0.1
    params = {
        # attn_layer: Linear(2*dec+enc -> enc), Tanh, Linear(enc -> 1)
        "w1": s * jax.random.normal(ks[0], (2 * DEC + ENC, ENC), jnp.float32),
        "b1": s * jax.random.normal(ks[1], (1, ENC), jnp.float32),
        "w2": s * jax.random.normal(ks[2], (1, ENC), jnp.float32),
        "b2": s * jax.random.normal(ks[3], (1, 1), jnp.float32),
        # LSTM(input_size=out_feats, hidden_size=dec); biases combined (b_ih + b_hh)
        "wih": s * jax.random.normal(ks[4], (OUT, 4 * DEC), jnp.float32),
        "whh": s * jax.random.normal(ks[5], (DEC, 4 * DEC), jnp.float32),
        "bl": s * jax.random.normal(ks[6], (1, 4 * DEC), jnp.float32),
        # fc: Linear(enc + out_feats -> out_feats), weight ~ N(0,1) per fc.weight.data.normal_()
        "fc_w": jax.random.normal(ks[7], (ENC + OUT, OUT), jnp.float32),
        "fc_b": s * jax.random.normal(ks[8], (1, OUT), jnp.float32),
        # fc_final: Linear(dec + enc -> out_feats)
        "fcf_w": s * jax.random.normal(ks[9], (DEC + ENC, OUT), jnp.float32),
        "fcf_b": s * jax.random.normal(ks[10], (1, OUT), jnp.float32),
    }
    input_encoded = jax.random.normal(ks[11], (B, T, ENC), jnp.float32)
    y_history = jax.random.normal(ks[12], (B, T - 1, OUT), jnp.float32)

    out = jax.block_until_ready(decoder_forward(input_encoded, y_history, params))
    ref = decoder_ref(input_encoded, y_history, params)
    assert out.shape == (B, OUT)
    np.testing.assert_allclose(np.asarray(out), np.asarray(ref), rtol=2e-3, atol=2e-3)
    print("KERNEL_OK")
</pallas_src>

<mosaic_0001>
module attributes {stable_mosaic.version = 11 : i64} {
  func.func @kernel(%arg0: memref<8x256xf32, #tpu.memory_space<vmem>>, %arg1: memref<7x8x1xf32, #tpu.memory_space<vmem>>, %arg2: memref<472x256xf32, #tpu.memory_space<vmem>>, %arg3: memref<8x1xf32, #tpu.memory_space<vmem>>) attributes {dimension_semantics = [], scalar_prefetch = 0 : i64, scratch_operands = 0 : i64, tpu.core_type = #tpu.core_type<tc>} {
    %c0 = arith.constant 0 : index
    %c0_0 = arith.constant 0 : index
    %0 = vector.load %arg0[%c0, %c0_0] : memref<8x256xf32, #tpu.memory_space<vmem>>, vector<8x256xf32>
    %c0_1 = arith.constant 0 : index
    %c0_2 = arith.constant 0 : index
    %1 = vector.load %arg2[%c0_1, %c0_2] : memref<472x256xf32, #tpu.memory_space<vmem>>, vector<64x256xf32>
    %c64 = arith.constant 64 : index
    %c0_3 = arith.constant 0 : index
    %2 = vector.load %arg2[%c64, %c0_3] : memref<472x256xf32, #tpu.memory_space<vmem>>, vector<1x256xf32>
    %c72 = arith.constant 72 : index
    %c0_4 = arith.constant 0 : index
    %3 = vector.load %arg2[%c72, %c0_4] : memref<472x256xf32, #tpu.memory_space<vmem>>, vector<256x256xf32>
    %c328 = arith.constant 328 : index
    %c0_5 = arith.constant 0 : index
    %4 = vector.load %arg2[%c328, %c0_5] : memref<472x256xf32, #tpu.memory_space<vmem>>, vector<8x256xf32>
    %c336 = arith.constant 336 : index
    %c0_6 = arith.constant 0 : index
    %5 = vector.load %arg2[%c336, %c0_6] : memref<472x256xf32, #tpu.memory_space<vmem>>, vector<8x256xf32>
    %c344 = arith.constant 344 : index
    %c0_7 = arith.constant 0 : index
    %6 = vector.load %arg2[%c344, %c0_7] : memref<472x256xf32, #tpu.memory_space<vmem>>, vector<32x256xf32>
    %c376 = arith.constant 376 : index
    %c0_8 = arith.constant 0 : index
    %7 = vector.load %arg2[%c376, %c0_8] : memref<472x256xf32, #tpu.memory_space<vmem>>, vector<32x128xf32>
    %c408 = arith.constant 408 : index
    %c0_9 = arith.constant 0 : index
    %8 = vector.load %arg2[%c408, %c0_9] : memref<472x256xf32, #tpu.memory_space<vmem>>, vector<1x128xf32>
    %c416 = arith.constant 416 : index
    %c0_10 = arith.constant 0 : index
    %9 = vector.load %arg2[%c416, %c0_10] : memref<472x256xf32, #tpu.memory_space<vmem>>, vector<1x128xf32>
    %c424 = arith.constant 424 : index
    %c0_11 = arith.constant 0 : index
    %10 = vector.load %arg2[%c424, %c0_11] : memref<472x256xf32, #tpu.memory_space<vmem>>, vector<1x32xf32>
    %c432 = arith.constant 432 : index
    %c0_12 = arith.constant 0 : index
    %11 = vector.load %arg2[%c432, %c0_12] : memref<472x256xf32, #tpu.memory_space<vmem>>, vector<1x1xf32>
    %c440 = arith.constant 440 : index
    %c0_13 = arith.constant 0 : index
    %12 = vector.load %arg2[%c440, %c0_13] : memref<472x256xf32, #tpu.memory_space<vmem>>, vector<1x1xf32>
    %c448 = arith.constant 448 : index
    %c0_14 = arith.constant 0 : index
    %13 = vector.load %arg2[%c448, %c0_14] : memref<472x256xf32, #tpu.memory_space<vmem>>, vector<1x32xf32>
    %c456 = arith.constant 456 : index
    %c0_15 = arith.constant 0 : index
    %14 = vector.load %arg2[%c456, %c0_15] : memref<472x256xf32, #tpu.memory_space<vmem>>, vector<1x32xf32>
    %c464 = arith.constant 464 : index
    %c0_16 = arith.constant 0 : index
    %15 = vector.load %arg2[%c464, %c0_16] : memref<472x256xf32, #tpu.memory_space<vmem>>, vector<1x1xf32>
    %cst = arith.constant dense<0.000000e+00> : vector<8x256xf32>
    %16 = tpu.matmul %0, %3, %cst {dimension_numbers = #tpu.dot_dimension_numbers<[1], [0], [0], [1], [0, 0, 1, 1], [], []>} : vector<8x256xf32>, vector<256x256xf32>, vector<8x256xf32> -> vector<8x256xf32>
    %cst_17 = arith.constant 0.000000e+00 : f32
    %17 = vector.broadcast %cst_17 : f32 to vector<8x32xf32>
    %cst_18 = arith.constant 0.000000e+00 : f32
    %18 = vector.broadcast %cst_18 : f32 to vector<8x32xf32>
    %cst_19 = arith.constant 0.000000e+00 : f32
    %19 = vector.broadcast %cst_19 : f32 to vector<8x32xf32>
    %c0_i32 = arith.constant 0 : i32
    %20 = tpu.concatenate %17, %18 in 1 : vector<8x32xf32>, vector<8x32xf32> -> vector<8x64xf32>
    %cst_20 = arith.constant dense<0.000000e+00> : vector<8x256xf32>
    %21 = tpu.matmul %20, %1, %cst_20 {dimension_numbers = #tpu.dot_dimension_numbers<[1], [0], [0], [1], [0, 0, 1, 1], [], []>} : vector<8x64xf32>, vector<64x256xf32>, vector<8x256xf32> -> vector<8x256xf32>
    %22 = vector.broadcast %2 : vector<1x256xf32> to vector<8x256xf32>
    %23 = arith.addf %21, %22 : vector<8x256xf32>
    %24 = arith.addf %23, %16 : vector<8x256xf32>
    %25 = math.tanh %24 : vector<8x256xf32>
    %cst_21 = arith.constant dense<0.000000e+00> : vector<8x8xf32>
    %26 = tpu.matmul %25, %4, %cst_21 {dimension_numbers = #tpu.dot_dimension_numbers<[1], [1], [0], [0], [0, 0, 1, 0], [], []>} : vector<8x256xf32>, vector<8x256xf32>, vector<8x8xf32> -> vector<8x8xf32>
    %cst_22 = arith.constant dense<0xFF800000> : vector<8xf32>
    %27 = vector.multi_reduction <maximumf>, %26, %cst_22 [1] : vector<8x8xf32> to vector<8xf32>
    %28 = vector.shape_cast %27 : vector<8xf32> to vector<8x1xf32>
    %29 = vector.broadcast %28 : vector<8x1xf32> to vector<8x8xf32>
    %30 = arith.subf %26, %29 : vector<8x8xf32>
    %31 = math.exp %30 : vector<8x8xf32>
    %cst_23 = arith.constant dense<0.000000e+00> : vector<8xf32>
    %32 = vector.multi_reduction <add>, %31, %cst_23 [1] : vector<8x8xf32> to vector<8xf32>
    %33 = vector.shape_cast %32 : vector<8xf32> to vector<8x1xf32>
    %34 = tpu.reciprocal %33 {approx = true} : vector<8x1xf32> -> vector<8x1xf32>
    %35 = vector.broadcast %34 : vector<8x1xf32> to vector<8x8xf32>
    %36 = arith.mulf %31, %35 : vector<8x8xf32>
    %cst_24 = arith.constant dense<0.000000e+00> : vector<8x256xf32>
    %37 = tpu.matmul %36, %5, %cst_24 {dimension_numbers = #tpu.dot_dimension_numbers<[1], [0], [0], [1], [0, 0, 1, 1], [], []>} : vector<8x8xf32>, vector<8x256xf32>, vector<8x256xf32> -> vector<8x256xf32>
    %38 = arith.mulf %37, %0 : vector<8x256xf32>
    %cst_25 = arith.constant dense<0.000000e+00> : vector<8x32xf32>
    %39 = tpu.matmul %38, %6, %cst_25 {dimension_numbers = #tpu.dot_dimension_numbers<[1], [1], [0], [0], [0, 0, 1, 0], [], []>} : vector<8x256xf32>, vector<32x256xf32>, vector<8x32xf32> -> vector<8x32xf32>
    %40 = arith.index_cast %c0_i32 : i32 to index
    %c0_26 = arith.constant 0 : index
    %c0_27 = arith.constant 0 : index
    %41 = vector.load %arg1[%40, %c0_26, %c0_27] : memref<7x8x1xf32, #tpu.memory_space<vmem>>, vector<1x8x1xf32>
    %42 = vector.shape_cast %41 : vector<1x8x1xf32> to vector<8x1xf32>
    %43 = vector.broadcast %11 : vector<1x1xf32> to vector<8x1xf32>
    %44 = arith.mulf %42, %43 : vector<8x1xf32>
    %45 = vector.broadcast %10 : vector<1x32xf32> to vector<8x32xf32>
    %46 = arith.mulf %39, %45 : vector<8x32xf32>
    %cst_28 = arith.constant dense<0.000000e+00> : vector<8xf32>
    %47 = vector.multi_reduction <add>, %46, %cst_28 [1] : vector<8x32xf32> to vector<8xf32>
    %48 = vector.shape_cast %47 : vector<8xf32> to vector<8x1xf32>
    %49 = arith.addf %48, %44 : vector<8x1xf32>
    %50 = vector.broadcast %12 : vector<1x1xf32> to vector<8x1xf32>
    %51 = arith.addf %49, %50 : vector<8x1xf32>
    %cst_29 = arith.constant dense<0.000000e+00> : vector<8x128xf32>
    %52 = tpu.matmul %17, %7, %cst_29 {dimension_numbers = #tpu.dot_dimension_numbers<[1], [0], [0], [1], [0, 0, 1, 1], [], []>} : vector<8x32xf32>, vector<32x128xf32>, vector<8x128xf32> -> vector<8x128xf32>
    %53 = vector.broadcast %51 : vector<8x1xf32> to vector<8x128xf32>
    %54 = vector.broadcast %8 : vector<1x128xf32> to vector<8x128xf32>
    %55 = arith.mulf %53, %54 : vector<8x128xf32>
    %56 = arith.addf %52, %55 : vector<8x128xf32>
    %57 = vector.broadcast %9 : vector<1x128xf32> to vector<8x128xf32>
    %58 = arith.addf %56, %57 : vector<8x128xf32>
    %59 = vector.extract_strided_slice %58 {offsets = [0, 0], sizes = [8, 96], strides = [1, 1]} : vector<8x128xf32> to vector<8x96xf32>
    %60 = arith.negf %59 : vector<8x96xf32>
    %61 = math.exp %60 : vector<8x96xf32>
    %cst_30 = arith.constant 1.000000e+00 : f32
    %62 = vector.broadcast %cst_30 : f32 to vector<8x96xf32>
    %63 = arith.addf %62, %61 : vector<8x96xf32>
    %64 = arith.divf %62, %63 : vector<8x96xf32>
    %65 = vector.extract_strided_slice %58 {offsets = [0, 96], sizes = [8, 32], strides = [1, 1]} : vector<8x128xf32> to vector<8x32xf32>
    %66 = math.tanh %65 : vector<8x32xf32>
    %67 = vector.extract_strided_slice %64 {offsets = [0, 0], sizes = [8, 32], strides = [1, 1]} : vector<8x96xf32> to vector<8x32xf32>
    %68 = vector.extract_strided_slice %64 {offsets = [0, 32], sizes = [8, 32], strides = [1, 1]} : vector<8x96xf32> to vector<8x32xf32>
    %69 = vector.extract_strided_slice %64 {offsets = [0, 64], sizes = [8, 32], strides = [1, 1]} : vector<8x96xf32> to vector<8x32xf32>
    %70 = arith.mulf %68, %18 : vector<8x32xf32>
    %71 = arith.mulf %67, %66 : vector<8x32xf32>
    %72 = arith.addf %70, %71 : vector<8x32xf32>
    %73 = math.tanh %72 : vector<8x32xf32>
    %74 = arith.mulf %69, %73 : vector<8x32xf32>
    %c1_i32 = arith.constant 1 : i32
    %75 = tpu.concatenate %74, %72 in 1 : vector<8x32xf32>, vector<8x32xf32> -> vector<8x64xf32>
    %cst_31 = arith.constant dense<0.000000e+00> : vector<8x256xf32>
    %76 = tpu.matmul %75, %1, %cst_31 {dimension_numbers = #tpu.dot_dimension_numbers<[1], [0], [0], [1], [0, 0, 1, 1], [], []>} : vector<8x64xf32>, vector<64x256xf32>, vector<8x256xf32> -> vector<8x256xf32>
    %77 = vector.broadcast %2 : vector<1x256xf32> to vector<8x256xf32>
    %78 = arith.addf %76, %77 : vector<8x256xf32>
    %79 = arith.addf %78, %16 : vector<8x256xf32>
    %80 = math.tanh %79 : vector<8x256xf32>
    %cst_32 = arith.constant dense<0.000000e+00> : vector<8x8xf32>
    %81 = tpu.matmul %80, %4, %cst_32 {dimension_numbers = #tpu.dot_dimension_numbers<[1], [1], [0], [0], [0, 0, 1, 0], [], []>} : vector<8x256xf32>, vector<8x256xf32>, vector<8x8xf32> -> vector<8x8xf32>
    %cst_33 = arith.constant dense<0xFF800000> : vector<8xf32>
    %82 = vector.multi_reduction <maximumf>, %81, %cst_33 [1] : vector<8x8xf32> to vector<8xf32>
    %83 = vector.shape_cast %82 : vector<8xf32> to vector<8x1xf32>
    %84 = vector.broadcast %83 : vector<8x1xf32> to vector<8x8xf32>
    %85 = arith.subf %81, %84 : vector<8x8xf32>
    %86 = math.exp %85 : vector<8x8xf32>
    %cst_34 = arith.constant dense<0.000000e+00> : vector<8xf32>
    %87 = vector.multi_reduction <add>, %86, %cst_34 [1] : vector<8x8xf32> to vector<8xf32>
    %88 = vector.shape_cast %87 : vector<8xf32> to vector<8x1xf32>
    %89 = tpu.reciprocal %88 {approx = true} : vector<8x1xf32> -> vector<8x1xf32>
    %90 = vector.broadcast %89 : vector<8x1xf32> to vector<8x8xf32>
    %91 = arith.mulf %86, %90 : vector<8x8xf32>
    %cst_35 = arith.constant dense<0.000000e+00> : vector<8x256xf32>
    %92 = tpu.matmul %91, %5, %cst_35 {dimension_numbers = #tpu.dot_dimension_numbers<[1], [0], [0], [1], [0, 0, 1, 1], [], []>} : vector<8x8xf32>, vector<8x256xf32>, vector<8x256xf32> -> vector<8x256xf32>
    %93 = arith.mulf %92, %0 : vector<8x256xf32>
    %cst_36 = arith.constant dense<0.000000e+00> : vector<8x32xf32>
    %94 = tpu.matmul %93, %6, %cst_36 {dimension_numbers = #tpu.dot_dimension_numbers<[1], [1], [0], [0], [0, 0, 1, 0], [], []>} : vector<8x256xf32>, vector<32x256xf32>, vector<8x32xf32> -> vector<8x32xf32>
    %95 = arith.index_cast %c1_i32 : i32 to index
    %c0_37 = arith.constant 0 : index
    %c0_38 = arith.constant 0 : index
    %96 = vector.load %arg1[%95, %c0_37, %c0_38] : memref<7x8x1xf32, #tpu.memory_space<vmem>>, vector<1x8x1xf32>
    %97 = vector.shape_cast %96 : vector<1x8x1xf32> to vector<8x1xf32>
    %98 = vector.broadcast %11 : vector<1x1xf32> to vector<8x1xf32>
    %99 = arith.mulf %97, %98 : vector<8x1xf32>
    %100 = vector.broadcast %10 : vector<1x32xf32> to vector<8x32xf32>
    %101 = arith.mulf %94, %100 : vector<8x32xf32>
    %cst_39 = arith.constant dense<0.000000e+00> : vector<8xf32>
    %102 = vector.multi_reduction <add>, %101, %cst_39 [1] : vector<8x32xf32> to vector<8xf32>
    %103 = vector.shape_cast %102 : vector<8xf32> to vector<8x1xf32>
    %104 = arith.addf %103, %99 : vector<8x1xf32>
    %105 = vector.broadcast %12 : vector<1x1xf32> to vector<8x1xf32>
    %106 = arith.addf %104, %105 : vector<8x1xf32>
    %cst_40 = arith.constant dense<0.000000e+00> : vector<8x128xf32>
    %107 = tpu.matmul %74, %7, %cst_40 {dimension_numbers = #tpu.dot_dimension_numbers<[1], [0], [0], [1], [0, 0, 1, 1], [], []>} : vector<8x32xf32>, vector<32x128xf32>, vector<8x128xf32> -> vector<8x128xf32>
    %108 = vector.broadcast %106 : vector<8x1xf32> to vector<8x128xf32>
    %109 = vector.broadcast %8 : vector<1x128xf32> to vector<8x128xf32>
    %110 = arith.mulf %108, %109 : vector<8x128xf32>
    %111 = arith.addf %107, %110 : vector<8x128xf32>
    %112 = vector.broadcast %9 : vector<1x128xf32> to vector<8x128xf32>
    %113 = arith.addf %111, %112 : vector<8x128xf32>
    %114 = vector.extract_strided_slice %113 {offsets = [0, 0], sizes = [8, 96], strides = [1, 1]} : vector<8x128xf32> to vector<8x96xf32>
    %115 = arith.negf %114 : vector<8x96xf32>
    %116 = math.exp %115 : vector<8x96xf32>
    %cst_41 = arith.constant 1.000000e+00 : f32
    %117 = vector.broadcast %cst_41 : f32 to vector<8x96xf32>
    %118 = arith.addf %117, %116 : vector<8x96xf32>
    %119 = arith.divf %117, %118 : vector<8x96xf32>
    %120 = vector.extract_strided_slice %113 {offsets = [0, 96], sizes = [8, 32], strides = [1, 1]} : vector<8x128xf32> to vector<8x32xf32>
    %121 = math.tanh %120 : vector<8x32xf32>
    %122 = vector.extract_strided_slice %119 {offsets = [0, 0], sizes = [8, 32], strides = [1, 1]} : vector<8x96xf32> to vector<8x32xf32>
    %123 = vector.extract_strided_slice %119 {offsets = [0, 32], sizes = [8, 32], strides = [1, 1]} : vector<8x96xf32> to vector<8x32xf32>
    %124 = vector.extract_strided_slice %119 {offsets = [0, 64], sizes = [8, 32], strides = [1, 1]} : vector<8x96xf32> to vector<8x32xf32>
    %125 = arith.mulf %123, %72 : vector<8x32xf32>
    %126 = arith.mulf %122, %121 : vector<8x32xf32>
    %127 = arith.addf %125, %126 : vector<8x32xf32>
    %128 = math.tanh %127 : vector<8x32xf32>
    %129 = arith.mulf %124, %128 : vector<8x32xf32>
    %c2_i32 = arith.constant 2 : i32
    %130 = tpu.concatenate %129, %127 in 1 : vector<8x32xf32>, vector<8x32xf32> -> vector<8x64xf32>
    %cst_42 = arith.constant dense<0.000000e+00> : vector<8x256xf32>
    %131 = tpu.matmul %130, %1, %cst_42 {dimension_numbers = #tpu.dot_dimension_numbers<[1], [0], [0], [1], [0, 0, 1, 1], [], []>} : vector<8x64xf32>, vector<64x256xf32>, vector<8x256xf32> -> vector<8x256xf32>
    %132 = vector.broadcast %2 : vector<1x256xf32> to vector<8x256xf32>
    %133 = arith.addf %131, %132 : vector<8x256xf32>
    %134 = arith.addf %133, %16 : vector<8x256xf32>
    %135 = math.tanh %134 : vector<8x256xf32>
    %cst_43 = arith.constant dense<0.000000e+00> : vector<8x8xf32>
    %136 = tpu.matmul %135, %4, %cst_43 {dimension_numbers = #tpu.dot_dimension_numbers<[1], [1], [0], [0], [0, 0, 1, 0], [], []>} : vector<8x256xf32>, vector<8x256xf32>, vector<8x8xf32> -> vector<8x8xf32>
    %cst_44 = arith.constant dense<0xFF800000> : vector<8xf32>
    %137 = vector.multi_reduction <maximumf>, %136, %cst_44 [1] : vector<8x8xf32> to vector<8xf32>
    %138 = vector.shape_cast %137 : vector<8xf32> to vector<8x1xf32>
    %139 = vector.broadcast %138 : vector<8x1xf32> to vector<8x8xf32>
    %140 = arith.subf %136, %139 : vector<8x8xf32>
    %141 = math.exp %140 : vector<8x8xf32>
    %cst_45 = arith.constant dense<0.000000e+00> : vector<8xf32>
    %142 = vector.multi_reduction <add>, %141, %cst_45 [1] : vector<8x8xf32> to vector<8xf32>
    %143 = vector.shape_cast %142 : vector<8xf32> to vector<8x1xf32>
    %144 = tpu.reciprocal %143 {approx = true} : vector<8x1xf32> -> vector<8x1xf32>
    %145 = vector.broadcast %144 : vector<8x1xf32> to vector<8x8xf32>
    %146 = arith.mulf %141, %145 : vector<8x8xf32>
    %cst_46 = arith.constant dense<0.000000e+00> : vector<8x256xf32>
    %147 = tpu.matmul %146, %5, %cst_46 {dimension_numbers = #tpu.dot_dimension_numbers<[1], [0], [0], [1], [0, 0, 1, 1], [], []>} : vector<8x8xf32>, vector<8x256xf32>, vector<8x256xf32> -> vector<8x256xf32>
    %148 = arith.mulf %147, %0 : vector<8x256xf32>
    %cst_47 = arith.constant dense<0.000000e+00> : vector<8x32xf32>
    %149 = tpu.matmul %148, %6, %cst_47 {dimension_numbers = #tpu.dot_dimension_numbers<[1], [1], [0], [0], [0, 0, 1, 0], [], []>} : vector<8x256xf32>, vector<32x256xf32>, vector<8x32xf32> -> vector<8x32xf32>
    %150 = arith.index_cast %c2_i32 : i32 to index
    %c0_48 = arith.constant 0 : index
    %c0_49 = arith.constant 0 : index
    %151 = vector.load %arg1[%150, %c0_48, %c0_49] : memref<7x8x1xf32, #tpu.memory_space<vmem>>, vector<1x8x1xf32>
    %152 = vector.shape_cast %151 : vector<1x8x1xf32> to vector<8x1xf32>
    %153 = vector.broadcast %11 : vector<1x1xf32> to vector<8x1xf32>
    %154 = arith.mulf %152, %153 : vector<8x1xf32>
    %155 = vector.broadcast %10 : vector<1x32xf32> to vector<8x32xf32>
    %156 = arith.mulf %149, %155 : vector<8x32xf32>
    %cst_50 = arith.constant dense<0.000000e+00> : vector<8xf32>
    %157 = vector.multi_reduction <add>, %156, %cst_50 [1] : vector<8x32xf32> to vector<8xf32>
    %158 = vector.shape_cast %157 : vector<8xf32> to vector<8x1xf32>
    %159 = arith.addf %158, %154 : vector<8x1xf32>
    %160 = vector.broadcast %12 : vector<1x1xf32> to vector<8x1xf32>
    %161 = arith.addf %159, %160 : vector<8x1xf32>
    %cst_51 = arith.constant dense<0.000000e+00> : vector<8x128xf32>
    %162 = tpu.matmul %129, %7, %cst_51 {dimension_numbers = #tpu.dot_dimension_numbers<[1], [0], [0], [1], [0, 0, 1, 1], [], []>} : vector<8x32xf32>, vector<32x128xf32>, vector<8x128xf32> -> vector<8x128xf32>
    %163 = vector.broadcast %161 : vector<8x1xf32> to vector<8x128xf32>
    %164 = vector.broadcast %8 : vector<1x128xf32> to vector<8x128xf32>
    %165 = arith.mulf %163, %164 : vector<8x128xf32>
    %166 = arith.addf %162, %165 : vector<8x128xf32>
    %167 = vector.broadcast %9 : vector<1x128xf32> to vector<8x128xf32>
    %168 = arith.addf %166, %167 : vector<8x128xf32>
    %169 = vector.extract_strided_slice %168 {offsets = [0, 0], sizes = [8, 96], strides = [1, 1]} : vector<8x128xf32> to vector<8x96xf32>
    %170 = arith.negf %169 : vector<8x96xf32>
    %171 = math.exp %170 : vector<8x96xf32>
    %cst_52 = arith.constant 1.000000e+00 : f32
    %172 = vector.broadcast %cst_52 : f32 to vector<8x96xf32>
    %173 = arith.addf %172, %171 : vector<8x96xf32>
    %174 = arith.divf %172, %173 : vector<8x96xf32>
    %175 = vector.extract_strided_slice %168 {offsets = [0, 96], sizes = [8, 32], strides = [1, 1]} : vector<8x128xf32> to vector<8x32xf32>
    %176 = math.tanh %175 : vector<8x32xf32>
    %177 = vector.extract_strided_slice %174 {offsets = [0, 0], sizes = [8, 32], strides = [1, 1]} : vector<8x96xf32> to vector<8x32xf32>
    %178 = vector.extract_strided_slice %174 {offsets = [0, 32], sizes = [8, 32], strides = [1, 1]} : vector<8x96xf32> to vector<8x32xf32>
    %179 = vector.extract_strided_slice %174 {offsets = [0, 64], sizes = [8, 32], strides = [1, 1]} : vector<8x96xf32> to vector<8x32xf32>
    %180 = arith.mulf %178, %127 : vector<8x32xf32>
    %181 = arith.mulf %177, %176 : vector<8x32xf32>
    %182 = arith.addf %180, %181 : vector<8x32xf32>
    %183 = math.tanh %182 : vector<8x32xf32>
    %184 = arith.mulf %179, %183 : vector<8x32xf32>
    %c3_i32 = arith.constant 3 : i32
    %185 = tpu.concatenate %184, %182 in 1 : vector<8x32xf32>, vector<8x32xf32> -> vector<8x64xf32>
    %cst_53 = arith.constant dense<0.000000e+00> : vector<8x256xf32>
    %186 = tpu.matmul %185, %1, %cst_53 {dimension_numbers = #tpu.dot_dimension_numbers<[1], [0], [0], [1], [0, 0, 1, 1], [], []>} : vector<8x64xf32>, vector<64x256xf32>, vector<8x256xf32> -> vector<8x256xf32>
    %187 = vector.broadcast %2 : vector<1x256xf32> to vector<8x256xf32>
    %188 = arith.addf %186, %187 : vector<8x256xf32>
    %189 = arith.addf %188, %16 : vector<8x256xf32>
    %190 = math.tanh %189 : vector<8x256xf32>
    %cst_54 = arith.constant dense<0.000000e+00> : vector<8x8xf32>
    %191 = tpu.matmul %190, %4, %cst_54 {dimension_numbers = #tpu.dot_dimension_numbers<[1], [1], [0], [0], [0, 0, 1, 0], [], []>} : vector<8x256xf32>, vector<8x256xf32>, vector<8x8xf32> -> vector<8x8xf32>
    %cst_55 = arith.constant dense<0xFF800000> : vector<8xf32>
    %192 = vector.multi_reduction <maximumf>, %191, %cst_55 [1] : vector<8x8xf32> to vector<8xf32>
    %193 = vector.shape_cast %192 : vector<8xf32> to vector<8x1xf32>
    %194 = vector.broadcast %193 : vector<8x1xf32> to vector<8x8xf32>
    %195 = arith.subf %191, %194 : vector<8x8xf32>
    %196 = math.exp %195 : vector<8x8xf32>
    %cst_56 = arith.constant dense<0.000000e+00> : vector<8xf32>
    %197 = vector.multi_reduction <add>, %196, %cst_56 [1] : vector<8x8xf32> to vector<8xf32>
    %198 = vector.shape_cast %197 : vector<8xf32> to vector<8x1xf32>
    %199 = tpu.reciprocal %198 {approx = true} : vector<8x1xf32> -> vector<8x1xf32>
    %200 = vector.broadcast %199 : vector<8x1xf32> to vector<8x8xf32>
    %201 = arith.mulf %196, %200 : vector<8x8xf32>
    %cst_57 = arith.constant dense<0.000000e+00> : vector<8x256xf32>
    %202 = tpu.matmul %201, %5, %cst_57 {dimension_numbers = #tpu.dot_dimension_numbers<[1], [0], [0], [1], [0, 0, 1, 1], [], []>} : vector<8x8xf32>, vector<8x256xf32>, vector<8x256xf32> -> vector<8x256xf32>
    %203 = arith.mulf %202, %0 : vector<8x256xf32>
    %cst_58 = arith.constant dense<0.000000e+00> : vector<8x32xf32>
    %204 = tpu.matmul %203, %6, %cst_58 {dimension_numbers = #tpu.dot_dimension_numbers<[1], [1], [0], [0], [0, 0, 1, 0], [], []>} : vector<8x256xf32>, vector<32x256xf32>, vector<8x32xf32> -> vector<8x32xf32>
    %205 = arith.index_cast %c3_i32 : i32 to index
    %c0_59 = arith.constant 0 : index
    %c0_60 = arith.constant 0 : index
    %206 = vector.load %arg1[%205, %c0_59, %c0_60] : memref<7x8x1xf32, #tpu.memory_space<vmem>>, vector<1x8x1xf32>
    %207 = vector.shape_cast %206 : vector<1x8x1xf32> to vector<8x1xf32>
    %208 = vector.broadcast %11 : vector<1x1xf32> to vector<8x1xf32>
    %209 = arith.mulf %207, %208 : vector<8x1xf32>
    %210 = vector.broadcast %10 : vector<1x32xf32> to vector<8x32xf32>
    %211 = arith.mulf %204, %210 : vector<8x32xf32>
    %cst_61 = arith.constant dense<0.000000e+00> : vector<8xf32>
    %212 = vector.multi_reduction <add>, %211, %cst_61 [1] : vector<8x32xf32> to vector<8xf32>
    %213 = vector.shape_cast %212 : vector<8xf32> to vector<8x1xf32>
    %214 = arith.addf %213, %209 : vector<8x1xf32>
    %215 = vector.broadcast %12 : vector<1x1xf32> to vector<8x1xf32>
    %216 = arith.addf %214, %215 : vector<8x1xf32>
    %cst_62 = arith.constant dense<0.000000e+00> : vector<8x128xf32>
    %217 = tpu.matmul %184, %7, %cst_62 {dimension_numbers = #tpu.dot_dimension_numbers<[1], [0], [0], [1], [0, 0, 1, 1], [], []>} : vector<8x32xf32>, vector<32x128xf32>, vector<8x128xf32> -> vector<8x128xf32>
    %218 = vector.broadcast %216 : vector<8x1xf32> to vector<8x128xf32>
    %219 = vector.broadcast %8 : vector<1x128xf32> to vector<8x128xf32>
    %220 = arith.mulf %218, %219 : vector<8x128xf32>
    %221 = arith.addf %217, %220 : vector<8x128xf32>
    %222 = vector.broadcast %9 : vector<1x128xf32> to vector<8x128xf32>
    %223 = arith.addf %221, %222 : vector<8x128xf32>
    %224 = vector.extract_strided_slice %223 {offsets = [0, 0], sizes = [8, 96], strides = [1, 1]} : vector<8x128xf32> to vector<8x96xf32>
    %225 = arith.negf %224 : vector<8x96xf32>
    %226 = math.exp %225 : vector<8x96xf32>
    %cst_63 = arith.constant 1.000000e+00 : f32
    %227 = vector.broadcast %cst_63 : f32 to vector<8x96xf32>
    %228 = arith.addf %227, %226 : vector<8x96xf32>
    %229 = arith.divf %227, %228 : vector<8x96xf32>
    %230 = vector.extract_strided_slice %223 {offsets = [0, 96], sizes = [8, 32], strides = [1, 1]} : vector<8x128xf32> to vector<8x32xf32>
    %231 = math.tanh %230 : vector<8x32xf32>
    %232 = vector.extract_strided_slice %229 {offsets = [0, 0], sizes = [8, 32], strides = [1, 1]} : vector<8x96xf32> to vector<8x32xf32>
    %233 = vector.extract_strided_slice %229 {offsets = [0, 32], sizes = [8, 32], strides = [1, 1]} : vector<8x96xf32> to vector<8x32xf32>
    %234 = vector.extract_strided_slice %229 {offsets = [0, 64], sizes = [8, 32], strides = [1, 1]} : vector<8x96xf32> to vector<8x32xf32>
    %235 = arith.mulf %233, %182 : vector<8x32xf32>
    %236 = arith.mulf %232, %231 : vector<8x32xf32>
    %237 = arith.addf %235, %236 : vector<8x32xf32>
    %238 = math.tanh %237 : vector<8x32xf32>
    %239 = arith.mulf %234, %238 : vector<8x32xf32>
    %c4_i32 = arith.constant 4 : i32
    %240 = tpu.concatenate %239, %237 in 1 : vector<8x32xf32>, vector<8x32xf32> -> vector<8x64xf32>
    %cst_64 = arith.constant dense<0.000000e+00> : vector<8x256xf32>
    %241 = tpu.matmul %240, %1, %cst_64 {dimension_numbers = #tpu.dot_dimension_numbers<[1], [0], [0], [1], [0, 0, 1, 1], [], []>} : vector<8x64xf32>, vector<64x256xf32>, vector<8x256xf32> -> vector<8x256xf32>
    %242 = vector.broadcast %2 : vector<1x256xf32> to vector<8x256xf32>
    %243 = arith.addf %241, %242 : vector<8x256xf32>
    %244 = arith.addf %243, %16 : vector<8x256xf32>
    %245 = math.tanh %244 : vector<8x256xf32>
    %cst_65 = arith.constant dense<0.000000e+00> : vector<8x8xf32>
    %246 = tpu.matmul %245, %4, %cst_65 {dimension_numbers = #tpu.dot_dimension_numbers<[1], [1], [0], [0], [0, 0, 1, 0], [], []>} : vector<8x256xf32>, vector<8x256xf32>, vector<8x8xf32> -> vector<8x8xf32>
    %cst_66 = arith.constant dense<0xFF800000> : vector<8xf32>
    %247 = vector.multi_reduction <maximumf>, %246, %cst_66 [1] : vector<8x8xf32> to vector<8xf32>
    %248 = vector.shape_cast %247 : vector<8xf32> to vector<8x1xf32>
    %249 = vector.broadcast %248 : vector<8x1xf32> to vector<8x8xf32>
    %250 = arith.subf %246, %249 : vector<8x8xf32>
    %251 = math.exp %250 : vector<8x8xf32>
    %cst_67 = arith.constant dense<0.000000e+00> : vector<8xf32>
    %252 = vector.multi_reduction <add>, %251, %cst_67 [1] : vector<8x8xf32> to vector<8xf32>
    %253 = vector.shape_cast %252 : vector<8xf32> to vector<8x1xf32>
    %254 = tpu.reciprocal %253 {approx = true} : vector<8x1xf32> -> vector<8x1xf32>
    %255 = vector.broadcast %254 : vector<8x1xf32> to vector<8x8xf32>
    %256 = arith.mulf %251, %255 : vector<8x8xf32>
    %cst_68 = arith.constant dense<0.000000e+00> : vector<8x256xf32>
    %257 = tpu.matmul %256, %5, %cst_68 {dimension_numbers = #tpu.dot_dimension_numbers<[1], [0], [0], [1], [0, 0, 1, 1], [], []>} : vector<8x8xf32>, vector<8x256xf32>, vector<8x256xf32> -> vector<8x256xf32>
    %258 = arith.mulf %257, %0 : vector<8x256xf32>
    %cst_69 = arith.constant dense<0.000000e+00> : vector<8x32xf32>
    %259 = tpu.matmul %258, %6, %cst_69 {dimension_numbers = #tpu.dot_dimension_numbers<[1], [1], [0], [0], [0, 0, 1, 0], [], []>} : vector<8x256xf32>, vector<32x256xf32>, vector<8x32xf32> -> vector<8x32xf32>
    %260 = arith.index_cast %c4_i32 : i32 to index
    %c0_70 = arith.constant 0 : index
    %c0_71 = arith.constant 0 : index
    %261 = vector.load %arg1[%260, %c0_70, %c0_71] : memref<7x8x1xf32, #tpu.memory_space<vmem>>, vector<1x8x1xf32>
    %262 = vector.shape_cast %261 : vector<1x8x1xf32> to vector<8x1xf32>
    %263 = vector.broadcast %11 : vector<1x1xf32> to vector<8x1xf32>
    %264 = arith.mulf %262, %263 : vector<8x1xf32>
    %265 = vector.broadcast %10 : vector<1x32xf32> to vector<8x32xf32>
    %266 = arith.mulf %259, %265 : vector<8x32xf32>
    %cst_72 = arith.constant dense<0.000000e+00> : vector<8xf32>
    %267 = vector.multi_reduction <add>, %266, %cst_72 [1] : vector<8x32xf32> to vector<8xf32>
    %268 = vector.shape_cast %267 : vector<8xf32> to vector<8x1xf32>
    %269 = arith.addf %268, %264 : vector<8x1xf32>
    %270 = vector.broadcast %12 : vector<1x1xf32> to vector<8x1xf32>
    %271 = arith.addf %269, %270 : vector<8x1xf32>
    %cst_73 = arith.constant dense<0.000000e+00> : vector<8x128xf32>
    %272 = tpu.matmul %239, %7, %cst_73 {dimension_numbers = #tpu.dot_dimension_numbers<[1], [0], [0], [1], [0, 0, 1, 1], [], []>} : vector<8x32xf32>, vector<32x128xf32>, vector<8x128xf32> -> vector<8x128xf32>
    %273 = vector.broadcast %271 : vector<8x1xf32> to vector<8x128xf32>
    %274 = vector.broadcast %8 : vector<1x128xf32> to vector<8x128xf32>
    %275 = arith.mulf %273, %274 : vector<8x128xf32>
    %276 = arith.addf %272, %275 : vector<8x128xf32>
    %277 = vector.broadcast %9 : vector<1x128xf32> to vector<8x128xf32>
    %278 = arith.addf %276, %277 : vector<8x128xf32>
    %279 = vector.extract_strided_slice %278 {offsets = [0, 0], sizes = [8, 96], strides = [1, 1]} : vector<8x128xf32> to vector<8x96xf32>
    %280 = arith.negf %279 : vector<8x96xf32>
    %281 = math.exp %280 : vector<8x96xf32>
    %cst_74 = arith.constant 1.000000e+00 : f32
    %282 = vector.broadcast %cst_74 : f32 to vector<8x96xf32>
    %283 = arith.addf %282, %281 : vector<8x96xf32>
    %284 = arith.divf %282, %283 : vector<8x96xf32>
    %285 = vector.extract_strided_slice %278 {offsets = [0, 96], sizes = [8, 32], strides = [1, 1]} : vector<8x128xf32> to vector<8x32xf32>
    %286 = math.tanh %285 : vector<8x32xf32>
    %287 = vector.extract_strided_slice %284 {offsets = [0, 0], sizes = [8, 32], strides = [1, 1]} : vector<8x96xf32> to vector<8x32xf32>
    %288 = vector.extract_strided_slice %284 {offsets = [0, 32], sizes = [8, 32], strides = [1, 1]} : vector<8x96xf32> to vector<8x32xf32>
    %289 = vector.extract_strided_slice %284 {offsets = [0, 64], sizes = [8, 32], strides = [1, 1]} : vector<8x96xf32> to vector<8x32xf32>
    %290 = arith.mulf %288, %237 : vector<8x32xf32>
    %291 = arith.mulf %287, %286 : vector<8x32xf32>
    %292 = arith.addf %290, %291 : vector<8x32xf32>
    %293 = math.tanh %292 : vector<8x32xf32>
    %294 = arith.mulf %289, %293 : vector<8x32xf32>
    %c5_i32 = arith.constant 5 : i32
    %295 = tpu.concatenate %294, %292 in 1 : vector<8x32xf32>, vector<8x32xf32> -> vector<8x64xf32>
    %cst_75 = arith.constant dense<0.000000e+00> : vector<8x256xf32>
    %296 = tpu.matmul %295, %1, %cst_75 {dimension_numbers = #tpu.dot_dimension_numbers<[1], [0], [0], [1], [0, 0, 1, 1], [], []>} : vector<8x64xf32>, vector<64x256xf32>, vector<8x256xf32> -> vector<8x256xf32>
    %297 = vector.broadcast %2 : vector<1x256xf32> to vector<8x256xf32>
    %298 = arith.addf %296, %297 : vector<8x256xf32>
    %299 = arith.addf %298, %16 : vector<8x256xf32>
    %300 = math.tanh %299 : vector<8x256xf32>
    %cst_76 = arith.constant dense<0.000000e+00> : vector<8x8xf32>
    %301 = tpu.matmul %300, %4, %cst_76 {dimension_numbers = #tpu.dot_dimension_numbers<[1], [1], [0], [0], [0, 0, 1, 0], [], []>} : vector<8x256xf32>, vector<8x256xf32>, vector<8x8xf32> -> vector<8x8xf32>
    %cst_77 = arith.constant dense<0xFF800000> : vector<8xf32>
    %302 = vector.multi_reduction <maximumf>, %301, %cst_77 [1] : vector<8x8xf32> to vector<8xf32>
    %303 = vector.shape_cast %302 : vector<8xf32> to vector<8x1xf32>
    %304 = vector.broadcast %303 : vector<8x1xf32> to vector<8x8xf32>
    %305 = arith.subf %301, %304 : vector<8x8xf32>
    %306 = math.exp %305 : vector<8x8xf32>
    %cst_78 = arith.constant dense<0.000000e+00> : vector<8xf32>
    %307 = vector.multi_reduction <add>, %306, %cst_78 [1] : vector<8x8xf32> to vector<8xf32>
    %308 = vector.shape_cast %307 : vector<8xf32> to vector<8x1xf32>
    %309 = tpu.reciprocal %308 {approx = true} : vector<8x1xf32> -> vector<8x1xf32>
    %310 = vector.broadcast %309 : vector<8x1xf32> to vector<8x8xf32>
    %311 = arith.mulf %306, %310 : vector<8x8xf32>
    %cst_79 = arith.constant dense<0.000000e+00> : vector<8x256xf32>
    %312 = tpu.matmul %311, %5, %cst_79 {dimension_numbers = #tpu.dot_dimension_numbers<[1], [0], [0], [1], [0, 0, 1, 1], [], []>} : vector<8x8xf32>, vector<8x256xf32>, vector<8x256xf32> -> vector<8x256xf32>
    %313 = arith.mulf %312, %0 : vector<8x256xf32>
    %cst_80 = arith.constant dense<0.000000e+00> : vector<8x32xf32>
    %314 = tpu.matmul %313, %6, %cst_80 {dimension_numbers = #tpu.dot_dimension_numbers<[1], [1], [0], [0], [0, 0, 1, 0], [], []>} : vector<8x256xf32>, vector<32x256xf32>, vector<8x32xf32> -> vector<8x32xf32>
    %315 = arith.index_cast %c5_i32 : i32 to index
    %c0_81 = arith.constant 0 : index
    %c0_82 = arith.constant 0 : index
    %316 = vector.load %arg1[%315, %c0_81, %c0_82] : memref<7x8x1xf32, #tpu.memory_space<vmem>>, vector<1x8x1xf32>
    %317 = vector.shape_cast %316 : vector<1x8x1xf32> to vector<8x1xf32>
    %318 = vector.broadcast %11 : vector<1x1xf32> to vector<8x1xf32>
    %319 = arith.mulf %317, %318 : vector<8x1xf32>
    %320 = vector.broadcast %10 : vector<1x32xf32> to vector<8x32xf32>
    %321 = arith.mulf %314, %320 : vector<8x32xf32>
    %cst_83 = arith.constant dense<0.000000e+00> : vector<8xf32>
    %322 = vector.multi_reduction <add>, %321, %cst_83 [1] : vector<8x32xf32> to vector<8xf32>
    %323 = vector.shape_cast %322 : vector<8xf32> to vector<8x1xf32>
    %324 = arith.addf %323, %319 : vector<8x1xf32>
    %325 = vector.broadcast %12 : vector<1x1xf32> to vector<8x1xf32>
    %326 = arith.addf %324, %325 : vector<8x1xf32>
    %cst_84 = arith.constant dense<0.000000e+00> : vector<8x128xf32>
    %327 = tpu.matmul %294, %7, %cst_84 {dimension_numbers = #tpu.dot_dimension_numbers<[1], [0], [0], [1], [0, 0, 1, 1], [], []>} : vector<8x32xf32>, vector<32x128xf32>, vector<8x128xf32> -> vector<8x128xf32>
    %328 = vector.broadcast %326 : vector<8x1xf32> to vector<8x128xf32>
    %329 = vector.broadcast %8 : vector<1x128xf32> to vector<8x128xf32>
    %330 = arith.mulf %328, %329 : vector<8x128xf32>
    %331 = arith.addf %327, %330 : vector<8x128xf32>
    %332 = vector.broadcast %9 : vector<1x128xf32> to vector<8x128xf32>
    %333 = arith.addf %331, %332 : vector<8x128xf32>
    %334 = vector.extract_strided_slice %333 {offsets = [0, 0], sizes = [8, 96], strides = [1, 1]} : vector<8x128xf32> to vector<8x96xf32>
    %335 = arith.negf %334 : vector<8x96xf32>
    %336 = math.exp %335 : vector<8x96xf32>
    %cst_85 = arith.constant 1.000000e+00 : f32
    %337 = vector.broadcast %cst_85 : f32 to vector<8x96xf32>
    %338 = arith.addf %337, %336 : vector<8x96xf32>
    %339 = arith.divf %337, %338 : vector<8x96xf32>
    %340 = vector.extract_strided_slice %333 {offsets = [0, 96], sizes = [8, 32], strides = [1, 1]} : vector<8x128xf32> to vector<8x32xf32>
    %341 = math.tanh %340 : vector<8x32xf32>
    %342 = vector.extract_strided_slice %339 {offsets = [0, 0], sizes = [8, 32], strides = [1, 1]} : vector<8x96xf32> to vector<8x32xf32>
    %343 = vector.extract_strided_slice %339 {offsets = [0, 32], sizes = [8, 32], strides = [1, 1]} : vector<8x96xf32> to vector<8x32xf32>
    %344 = vector.extract_strided_slice %339 {offsets = [0, 64], sizes = [8, 32], strides = [1, 1]} : vector<8x96xf32> to vector<8x32xf32>
    %345 = arith.mulf %343, %292 : vector<8x32xf32>
    %346 = arith.mulf %342, %341 : vector<8x32xf32>
    %347 = arith.addf %345, %346 : vector<8x32xf32>
    %348 = math.tanh %347 : vector<8x32xf32>
    %349 = arith.mulf %344, %348 : vector<8x32xf32>
    %c6_i32 = arith.constant 6 : i32
    %350 = tpu.concatenate %349, %347 in 1 : vector<8x32xf32>, vector<8x32xf32> -> vector<8x64xf32>
    %cst_86 = arith.constant dense<0.000000e+00> : vector<8x256xf32>
    %351 = tpu.matmul %350, %1, %cst_86 {dimension_numbers = #tpu.dot_dimension_numbers<[1], [0], [0], [1], [0, 0, 1, 1], [], []>} : vector<8x64xf32>, vector<64x256xf32>, vector<8x256xf32> -> vector<8x256xf32>
    %352 = vector.broadcast %2 : vector<1x256xf32> to vector<8x256xf32>
    %353 = arith.addf %351, %352 : vector<8x256xf32>
    %354 = arith.addf %353, %16 : vector<8x256xf32>
    %355 = math.tanh %354 : vector<8x256xf32>
    %cst_87 = arith.constant dense<0.000000e+00> : vector<8x8xf32>
    %356 = tpu.matmul %355, %4, %cst_87 {dimension_numbers = #tpu.dot_dimension_numbers<[1], [1], [0], [0], [0, 0, 1, 0], [], []>} : vector<8x256xf32>, vector<8x256xf32>, vector<8x8xf32> -> vector<8x8xf32>
    %cst_88 = arith.constant dense<0xFF800000> : vector<8xf32>
    %357 = vector.multi_reduction <maximumf>, %356, %cst_88 [1] : vector<8x8xf32> to vector<8xf32>
    %358 = vector.shape_cast %357 : vector<8xf32> to vector<8x1xf32>
    %359 = vector.broadcast %358 : vector<8x1xf32> to vector<8x8xf32>
    %360 = arith.subf %356, %359 : vector<8x8xf32>
    %361 = math.exp %360 : vector<8x8xf32>
    %cst_89 = arith.constant dense<0.000000e+00> : vector<8xf32>
    %362 = vector.multi_reduction <add>, %361, %cst_89 [1] : vector<8x8xf32> to vector<8xf32>
    %363 = vector.shape_cast %362 : vector<8xf32> to vector<8x1xf32>
    %364 = tpu.reciprocal %363 {approx = true} : vector<8x1xf32> -> vector<8x1xf32>
    %365 = vector.broadcast %364 : vector<8x1xf32> to vector<8x8xf32>
    %366 = arith.mulf %361, %365 : vector<8x8xf32>
    %cst_90 = arith.constant dense<0.000000e+00> : vector<8x256xf32>
    %367 = tpu.matmul %366, %5, %cst_90 {dimension_numbers = #tpu.dot_dimension_numbers<[1], [0], [0], [1], [0, 0, 1, 1], [], []>} : vector<8x8xf32>, vector<8x256xf32>, vector<8x256xf32> -> vector<8x256xf32>
    %368 = arith.mulf %367, %0 : vector<8x256xf32>
    %cst_91 = arith.constant dense<0.000000e+00> : vector<8x32xf32>
    %369 = tpu.matmul %368, %6, %cst_91 {dimension_numbers = #tpu.dot_dimension_numbers<[1], [1], [0], [0], [0, 0, 1, 0], [], []>} : vector<8x256xf32>, vector<32x256xf32>, vector<8x32xf32> -> vector<8x32xf32>
    %370 = arith.index_cast %c6_i32 : i32 to index
    %c0_92 = arith.constant 0 : index
    %c0_93 = arith.constant 0 : index
    %371 = vector.load %arg1[%370, %c0_92, %c0_93] : memref<7x8x1xf32, #tpu.memory_space<vmem>>, vector<1x8x1xf32>
    %372 = vector.shape_cast %371 : vector<1x8x1xf32> to vector<8x1xf32>
    %373 = vector.broadcast %11 : vector<1x1xf32> to vector<8x1xf32>
    %374 = arith.mulf %372, %373 : vector<8x1xf32>
    %375 = vector.broadcast %10 : vector<1x32xf32> to vector<8x32xf32>
    %376 = arith.mulf %369, %375 : vector<8x32xf32>
    %cst_94 = arith.constant dense<0.000000e+00> : vector<8xf32>
    %377 = vector.multi_reduction <add>, %376, %cst_94 [1] : vector<8x32xf32> to vector<8xf32>
    %378 = vector.shape_cast %377 : vector<8xf32> to vector<8x1xf32>
    %379 = arith.addf %378, %374 : vector<8x1xf32>
    %380 = vector.broadcast %12 : vector<1x1xf32> to vector<8x1xf32>
    %381 = arith.addf %379, %380 : vector<8x1xf32>
    %cst_95 = arith.constant dense<0.000000e+00> : vector<8x128xf32>
    %382 = tpu.matmul %349, %7, %cst_95 {dimension_numbers = #tpu.dot_dimension_numbers<[1], [0], [0], [1], [0, 0, 1, 1], [], []>} : vector<8x32xf32>, vector<32x128xf32>, vector<8x128xf32> -> vector<8x128xf32>
    %383 = vector.broadcast %381 : vector<8x1xf32> to vector<8x128xf32>
    %384 = vector.broadcast %8 : vector<1x128xf32> to vector<8x128xf32>
    %385 = arith.mulf %383, %384 : vector<8x128xf32>
    %386 = arith.addf %382, %385 : vector<8x128xf32>
    %387 = vector.broadcast %9 : vector<1x128xf32> to vector<8x128xf32>
    %388 = arith.addf %386, %387 : vector<8x128xf32>
    %389 = vector.extract_strided_slice %388 {offsets = [0, 0], sizes = [8, 96], strides = [1, 1]} : vector<8x128xf32> to vector<8x96xf32>
    %390 = arith.negf %389 : vector<8x96xf32>
    %391 = math.exp %390 : vector<8x96xf32>
    %cst_96 = arith.constant 1.000000e+00 : f32
    %392 = vector.broadcast %cst_96 : f32 to vector<8x96xf32>
    %393 = arith.addf %392, %391 : vector<8x96xf32>
    %394 = arith.divf %392, %393 : vector<8x96xf32>
    %395 = vector.extract_strided_slice %388 {offsets = [0, 96], sizes = [8, 32], strides = [1, 1]} : vector<8x128xf32> to vector<8x32xf32>
    %396 = math.tanh %395 : vector<8x32xf32>
    %397 = vector.extract_strided_slice %394 {offsets = [0, 0], sizes = [8, 32], strides = [1, 1]} : vector<8x96xf32> to vector<8x32xf32>
    %398 = vector.extract_strided_slice %394 {offsets = [0, 32], sizes = [8, 32], strides = [1, 1]} : vector<8x96xf32> to vector<8x32xf32>
    %399 = vector.extract_strided_slice %394 {offsets = [0, 64], sizes = [8, 32], strides = [1, 1]} : vector<8x96xf32> to vector<8x32xf32>
    %400 = arith.mulf %398, %347 : vector<8x32xf32>
    %401 = arith.mulf %397, %396 : vector<8x32xf32>
    %402 = arith.addf %400, %401 : vector<8x32xf32>
    %403 = math.tanh %402 : vector<8x32xf32>
    %404 = arith.mulf %399, %403 : vector<8x32xf32>
    %c7_i32 = arith.constant 7 : i32
    %405 = vector.broadcast %13 : vector<1x32xf32> to vector<8x32xf32>
    %406 = arith.mulf %404, %405 : vector<8x32xf32>
    %cst_97 = arith.constant dense<0.000000e+00> : vector<8xf32>
    %407 = vector.multi_reduction <add>, %406, %cst_97 [1] : vector<8x32xf32> to vector<8xf32>
    %408 = vector.shape_cast %407 : vector<8xf32> to vector<8x1xf32>
    %409 = vector.broadcast %14 : vector<1x32xf32> to vector<8x32xf32>
    %410 = arith.mulf %369, %409 : vector<8x32xf32>
    %cst_98 = arith.constant dense<0.000000e+00> : vector<8xf32>
    %411 = vector.multi_reduction <add>, %410, %cst_98 [1] : vector<8x32xf32> to vector<8xf32>
    %412 = vector.shape_cast %411 : vector<8xf32> to vector<8x1xf32>
    %413 = arith.addf %408, %412 : vector<8x1xf32>
    %414 = vector.broadcast %15 : vector<1x1xf32> to vector<8x1xf32>
    %415 = arith.addf %413, %414 : vector<8x1xf32>
    %c0_99 = arith.constant 0 : index
    %c0_100 = arith.constant 0 : index
    %416 = vector.load %arg3[%c0_99, %c0_100] : memref<8x1xf32, #tpu.memory_space<vmem>>, vector<8x1xf32>
    tpu.vector_store %arg3[%c0_99, %c0_100], %415 {strides = array<i32>} : memref<8x1xf32, #tpu.memory_space<vmem>>, vector<8x1xf32>,
    return
  }
}

</mosaic_0001>

<bundles_post_ra>
// kernel: tpu_custom_call.1
= control target key start
LH: loop header
LB: loop body
LE: loop exit
PB: predicated region body
PF: predicated region fallthrough
CT: control target
= control target key end

     0   :  { %8 = vsyncpa [#allocation3], 0  ;;  %s3770_s12 = smov [#allocation2]   ;;  %s4259_s0 = inlined_call_operand.vmem [shape: f32[8,256], index: 0, kind: input, shape index: {}]   ;;  %s4260_s1 = inlined_call_operand.vmem [shape: f32[7,8,1], index: 1, kind: input, shape index: {}]   ;;  %s4261_s2 = inlined_call_operand.hbm [shape: f32[472,256], index: 2, kind: input, shape index: {}]   ;;  %s4262_s3 = inlined_call_operand.vmem [shape: f32[8,1], index: 3, kind: output, shape index: {}]  }
   0x1   :  { %s18_s13 = sshll.u32 %s3770_s12, 4  ;;  %s3746_s16 = scalar_lea.hbm %s4261_s2, 15104  ;;  %s19_s13 = int_to_ptr.vmem [resolvable:$true] %s18_s13 }
   0x2   :  { %p3747_p0 = scmp.ne.s32.totalorder %s4261_s2, %s3746_s16  ;;  %p3750_p1 = scmp.lt.u32.totalorder %s3746_s16, %s4261_s2 }
   0x4   :  { %p3752_p2 = pnand %p3750_p1, %p3747_p0 }
   0x6   :  { %3755 = shalt.err (!%p3752_p2)
}
   0x7   :  { %s3756_s21 = scalar_lea.vmem %s19_s13, 15104  ;;  %p3761_p4 = scmp.lt.s32.totalorder %s19_s13, %s19_s13 }
   0x8   :  { %p3757_p3 = scmp.ne.s32.totalorder %s19_s13, %s3756_s21  ;;  %p3762_p5 = scmp.lt.s32.totalorder %s3756_s21, %s3756_s21 }
   0xa   :  { %p3763_p6 = por %p3762_p5, %p3761_p4 }
   0xc   :  { %p3764_p7 = pnand %p3763_p6, %p3757_p3 }
   0xe   :  { %3767 = shalt.err (!%p3764_p7)
}
   0xf   :  { %s3771_s22 = smov 256   ;;  %s3772_s23 = smov 16  }
  0x10   :  { %24 = dma.hbm_to_vmem [thread:$0]  %s4261_s2, 15104, %s19_s13, [#allocation3], %s3771_s22, %s3771_s22, %s3772_s23  }
  0x11   :  { %3768 = dma.done.wait [#allocation3], 15104  }
  0x12   :  { %3769 = vsyncadd [#allocation3], 4294952192  ;;  %v3773_v0 = vmov 0.0   ;;  %v49_v1 = vld [vmem:[#allocation2 + $0x98] sm:$0xff]  ;;  %v51_v2 = vld [vmem:[#allocation2 + $0xa8] sm:$0xff]  ;;  %vm367_vm0 = vcmask 64512  }
  0x13   :  { %286 = vmatprep.mubr.f32.mxu1 %v3773_v0  ;;  %v48_v3 = vld [vmem:[#allocation2 + $0x90] sm:$0xff]  ;;  %v3338_v4 = vpack.c.bf16 %v51_v2, %v49_v1  ;;  %v50_v5 = vld [vmem:[#allocation2 + $0xa0] sm:$0xff]  ;;  %v53_v6 = vld [vmem:[#allocation2 + $0xb8] sm:$0xff]  ;;  %vm3775_vm1 = vmmov 0   ;;  %vm528_vm2 = vcmask 261120   ;;  %s3777_s4 = smov 32  }
  0x14   :  { %v55_v7 = vld [vmem:[#allocation2 + $0xc8] sm:$0xff]  ;;  %v3340_v8 = vpack.c.bf16 %v50_v5, %v48_v3  ;;  %v52_v10 = vld [vmem:[#allocation2 + $0xb0] sm:$0xff]  ;;  %v54_v11 = vld [vmem:[#allocation2 + $0xc0] sm:$0xff]  ;;  %s3778_s5 = smov 64   ;;  %vm218_vm3 = vcmask 523264   ;;  %vm3187_vm4 = vcmask 7168  }
  0x15   :  { %v3342_v9 = vpack.c.bf16 %v55_v7, %v53_v6  ;;  %v57_v12 = vld [vmem:[#allocation2 + $0xd8] sm:$0xff]  ;;  %3339 = vmatprep.subr.bf16.mxu0 %v3338_v4  ;;  %v59_v13 = vld [vmem:[#allocation2 + $0xe8] sm:$0xff]  ;;  %v3344_v14 = vpack.c.bf16 %v54_v11, %v52_v10  ;;  %v56_v16 = vld [vmem:[#allocation2 + $0xd0] sm:$0xff] }
  0x16   :  { %3341 = vmatpush1.bf16.msra.mxu0 %v3340_v8  ;;  %v3346_v15 = vpack.c.bf16 %v59_v13, %v57_v12  ;;  %v58_v17 = vld [vmem:[#allocation2 + $0xe0] sm:$0xff]  ;;  %v61_v18 = vld [vmem:[#allocation2 + $0xf8] sm:$0xff]  ;;  %v63_v19 = vld [vmem:[#allocation2 + $0x108] sm:$0xff] }
  0x17   :  { %3343 = vmatprep.subr.bf16.mxu0 %v3342_v9  ;;  %v3348_v20 = vpack.c.bf16 %v58_v17, %v56_v16  ;;  %v3350_v21 = vpack.c.bf16 %v63_v19, %v61_v18  ;;  %v60_v22 = vld [vmem:[#allocation2 + $0xf0] sm:$0xff]  ;;  %v62_v23 = vld [vmem:[#allocation2 + $0x100] sm:$0xff]  ;;  %v65_v24 = vld [vmem:[#allocation2 + $0x118] sm:$0xff] }
  0x18   :  { %v67_v25 = vld [vmem:[#allocation2 + $0x128] sm:$0xff]  ;;  %v3352_v26 = vpack.c.bf16 %v62_v23, %v60_v22  ;;  %v64_v28 = vld [vmem:[#allocation2 + $0x110] sm:$0xff]  ;;  %v66_v29 = vld [vmem:[#allocation2 + $0x120] sm:$0xff] }
  0x19   :  { %v3354_v27 = vpack.c.bf16 %v67_v25, %v65_v24  ;;  %v69_v30 = vld [vmem:[#allocation2 + $0x138] sm:$0xff]  ;;  %v71_v31 = vld [vmem:[#allocation2 + $0x148] sm:$0xff]  ;;  %v3356_v32 = vpack.c.bf16 %v66_v29, %v64_v28  ;;  %v30_v35 = vld [vmem:[#allocation2] sm:$0xff] }
  0x1a   :  { %3345 = vmatpush1.bf16.msra.mxu0 %v3344_v14  ;;  %v31_v33 = vld [vmem:[#allocation2 + $0x8] sm:$0xff]  ;;  %v33_v34 = vld [vmem:[#allocation2 + $0x18] sm:$0xff]  ;;  %v3358_v36 = vpack.c.bf16 %v71_v31, %v69_v30  ;;  %v68_v37 = vld [vmem:[#allocation2 + $0x130] sm:$0xff] }
  0x1b   :  { %3347 = vmatprep.subr.bf16.mxu0 %v3346_v15  ;;  %v70_v38 = vld [vmem:[#allocation2 + $0x140] sm:$0xff]  ;;  %v3812_v39 = vpack.c.bf16 %v33_v34, %v31_v33  ;;  %v32_v40 = vld [vmem:[#allocation2 + $0x10] sm:$0xff]  ;;  %v73_v41 = vld [vmem:[#allocation2 + $0x158] sm:$0xff] }
  0x1c   :  { %v75_v42 = vld [vmem:[#allocation2 + $0x168] sm:$0xff]  ;;  %v3814_v43 = vpack.c.bf16 %v32_v40, %v30_v35  ;;  %v37_v45 = vld [vmem:[#allocation2 + $0x38] sm:$0xff]  ;;  %v34_v46 = vld [vmem:[#allocation2 + $0x20] sm:$0xff]  ;;  %v3360_v48 = vpack.c.bf16 %v70_v38, %v68_v37 }
  0x1d   :  { %v35_v44 = vld [vmem:[#allocation2 + $0x28] sm:$0xff]  ;;  %3403 = vmatprep.subr.bf16.mxu1 %v3812_v39  ;;  %v36_v47 = vld [vmem:[#allocation2 + $0x30] sm:$0xff]  ;;  %v74_v50 = vld [vmem:[#allocation2 + $0x160] sm:$0xff]  ;;  %v3362_v53 = vpack.c.bf16 %v75_v42, %v73_v41 }
  0x1e   :  { %3349 = vmatpush1.bf16.msra.mxu0 %v3348_v20  ;;  %v72_v49 = vld [vmem:[#allocation2 + $0x150] sm:$0xff]  ;;  %3405 = vmatpush1.bf16.msra.mxu1 %v3814_v43  ;;  %v3818_v51 = vpack.c.bf16 %v37_v45, %v35_v44  ;;  %v3820_v52 = vpack.c.bf16 %v36_v47, %v34_v46  ;;  %v77_v54 = vld [vmem:[#allocation2 + $0x178] sm:$0xff]  ;;  %v39_v55 = vld [vmem:[#allocation2 + $0x48] sm:$0xff] }
  0x1f   :  { %3351 = vmatprep.subr.bf16.mxu0 %v3350_v21  ;;  %v41_v56 = vld [vmem:[#allocation2 + $0x58] sm:$0xff]  ;;  %v79_v57 = vld [vmem:[#allocation2 + $0x188] sm:$0xff]  ;;  %v38_v59 = vld [vmem:[#allocation2 + $0x40] sm:$0xff]  ;;  %v3364_v61 = vpack.c.bf16 %v74_v50, %v72_v49 }
  0x20   :  { %3407 = vmatprep.subr.bf16.mxu1 %v3818_v51  ;;  %v3823_v58 = vpack.c.bf16 %v41_v56, %v39_v55  ;;  %v40_v60 = vld [vmem:[#allocation2 + $0x50] sm:$0xff]  ;;  %v43_v1 = vld [vmem:[#allocation2 + $0x68] sm:$0xff]  ;;  %v45_v2 = vld [vmem:[#allocation2 + $0x78] sm:$0xff]  ;;  %v3366_v3 = vpack.c.bf16 %v79_v57, %v77_v54 }
  0x21   :  { %v76_v62 = vld [vmem:[#allocation2 + $0x170] sm:$0xff]  ;;  %v3826_v63 = vpack.c.bf16 %v40_v60, %v38_v59  ;;  %v78_v4 = vld [vmem:[#allocation2 + $0x180] sm:$0xff]  ;;  %v3829_v5 = vpack.c.bf16 %v45_v2, %v43_v1  ;;  %v81_v8 = vld [vmem:[#allocation2 + $0x198] sm:$0xff] }
  0x22   :  { %3353 = vmatpush1.bf16.msra.mxu0 %v3352_v26  ;;  %3409 = vmatpush1.bf16.msra.mxu1 %v3820_v52  ;;  %v42_v6 = vld [vmem:[#allocation2 + $0x60] sm:$0xff]  ;;  %v44_v7 = vld [vmem:[#allocation2 + $0x70] sm:$0xff]  ;;  %v83_v9 = vld [vmem:[#allocation2 + $0x1a8] sm:$0xff]  ;;  %v3368_v11 = vpack.c.bf16 %v78_v4, %v76_v62 }
  0x23   :  { %3355 = vmatprep.subr.bf16.mxu0 %v3354_v27  ;;  %3411 = vmatprep.subr.bf16.mxu1 %v3823_v58  ;;  %v3834_v10 = vld [vmem:[%s4259_s0 + $0x8] sm:$0xff]  ;;  %v3838_v12 = vpack.c.bf16 %v44_v7, %v42_v6  ;;  %v3370_v13 = vpack.c.bf16 %v83_v9, %v81_v8  ;;  %v80_v14 = vld [vmem:[#allocation2 + $0x190] sm:$0xff]  ;;  %v82_v15 = vld [vmem:[#allocation2 + $0x1a0] sm:$0xff]  ;;  %v208_v8 = vlaneseq }
  0x24   :  { %200 = vmatprep.mubr.f32.mxu0 %v3834_v10  ;;  %v85_v16 = vld [vmem:[#allocation2 + $0x1b8] sm:$0xff]  ;;  %v87_v17 = vld [vmem:[#allocation2 + $0x1c8] sm:$0xff]  ;;  %v3372_v18 = vpack.c.bf16 %v82_v15, %v80_v14  ;;  %v84_v20 = vld [vmem:[#allocation2 + $0x1b0] sm:$0xff] }
  0x25   :  { %v3374_v19 = vpack.c.bf16 %v87_v17, %v85_v16  ;;  %v86_v21 = vld [vmem:[#allocation2 + $0x1c0] sm:$0xff]  ;;  %v89_v22 = vld [vmem:[#allocation2 + $0x1d8] sm:$0xff]  ;;  %v91_v23 = vld [vmem:[#allocation2 + $0x1e8] sm:$0xff]  ;;  %v209_v9 = vshrl.u32 %v208_v8, 7 }
  0x26   :  { %3357 = vmatpush1.bf16.msra.mxu0 %v3356_v32  ;;  %3413 = vmatpush1.bf16.msra.mxu1 %v3826_v63  ;;  %v3376_v24 = vpack.c.bf16 %v86_v21, %v84_v20  ;;  %v3378_v25 = vpack.c.bf16 %v91_v23, %v89_v22  ;;  %v88_v26 = vld [vmem:[#allocation2 + $0x1d0] sm:$0xff]  ;;  %v90_v27 = vld [vmem:[#allocation2 + $0x1e0] sm:$0xff]  ;;  %v93_v28 = vld [vmem:[#allocation2 + $0x1f8] sm:$0xff] }
  0x27   :  { %3359 = vmatprep.subr.bf16.mxu0 %v3358_v36  ;;  %3415 = vmatprep.subr.bf16.mxu1 %v3829_v5  ;;  %v95_v29 = vld [vmem:[#allocation2 + $0x208] sm:$0xff]  ;;  %v3380_v30 = vpack.c.bf16 %v90_v27, %v88_v26  ;;  %v92_v32 = vld [vmem:[#allocation2 + $0x1f0] sm:$0xff]  ;;  %v94_v33 = vld [vmem:[#allocation2 + $0x200] sm:$0xff]  ;;  %v214_v14 = vsub.s32 1, %v209_v9 }
  0x28   :  { %v3382_v31 = vpack.c.bf16 %v95_v29, %v93_v28  ;;  %v97_v34 = vld [vmem:[#allocation2 + $0x218] sm:$0xff]  ;;  %v99_v35 = vld [vmem:[#allocation2 + $0x228] sm:$0xff]  ;;  %v3384_v36 = vpack.c.bf16 %v94_v33, %v92_v32  ;;  %v96_v38 = vld [vmem:[#allocation2 + $0x210] sm:$0xff] }
  0x29   :  { %v3386_v37 = vpack.c.bf16 %v99_v35, %v97_v34  ;;  %v98_v40 = vld [vmem:[#allocation2 + $0x220] sm:$0xff]  ;;  %v101_v41 = vld [vmem:[#allocation2 + $0x238] sm:$0xff]  ;;  %v103_v42 = vld [vmem:[#allocation2 + $0x248] sm:$0xff] }
  0x2a   :  { %3361 = vmatpush1.bf16.msra.mxu0 %v3360_v48  ;;  %3417 = vmatpush1.bf16.msra.mxu1 %v3838_v12  ;;  %v3388_v44 = vpack.c.bf16 %v98_v40, %v96_v38  ;;  %v3390_v45 = vpack.c.bf16 %v103_v42, %v101_v41  ;;  %v100_v46 = vld [vmem:[#allocation2 + $0x230] sm:$0xff]  ;;  %v102_v47 = vld [vmem:[#allocation2 + $0x240] sm:$0xff]  ;;  %v105_v48 = vld [vmem:[#allocation2 + $0x258] sm:$0xff] }
  0x2b   :  { %3363 = vmatprep.subr.bf16.mxu0 %v3362_v53  ;;  %v107_v49 = vld [vmem:[#allocation2 + $0x268] sm:$0xff]  ;;  %v3392_v50 = vpack.c.bf16 %v102_v47, %v100_v46  ;;  %v104_v54 = vld [vmem:[#allocation2 + $0x250] sm:$0xff]  ;;  %v106_v55 = vld [vmem:[#allocation2 + $0x260] sm:$0xff] }
  0x2c   :  { %v3394_v53 = vpack.c.bf16 %v107_v49, %v105_v48  ;;  %v109_v56 = vld [vmem:[#allocation2 + $0x278] sm:$0xff]  ;;  %v111_v57 = vld [vmem:[#allocation2 + $0x288] sm:$0xff]  ;;  %v3396_v59 = vpack.c.bf16 %v106_v55, %v104_v54  ;;  %v110_v62 = vld [vmem:[#allocation2 + $0x280] sm:$0xff] }
  0x2d   :  { %287 = vmatmul.mubr.f32.vlgmr.msra.gmra.mrb[0].mxu1 %v3773_v0  ;;  %v3398_v60 = vpack.c.bf16 %v111_v57, %v109_v56  ;;  %v3846_v2 = vld [vmem:[%s4259_s0] sm:$0xff]  ;;  %v3851_v4 = vld [vmem:[#allocation2 + $0x290] sm:$0xff]  ;;  %v3870_v33 = vld [vmem:[#allocation2 + $0x2a8] sm:$0xff] }
  0x2e   :  { %3365 = vmatpush1.bf16.msra.mxu0 %v3364_v61  ;;  %v108_v61 = vld [vmem:[#allocation2 + $0x270] sm:$0xff]  ;;  %v3873_v34 = vld [vmem:[#allocation2 + $0x2a0] sm:$0xff]  ;;  %v117_v35 = vld [vmem:[#allocation2 + $0x2b8] sm:$0xff] }
  0x2f   :  { %3367 = vmatprep.subr.bf16.mxu0 %v3366_v3  ;;  %v3400_v1 = vpack.c.bf16 %v110_v62, %v108_v61  ;;  %v3849_v3 = vld [vmem:[#allocation2 + $0x298] sm:$0xff]  ;;  %v118_v40 = vld [vmem:[#allocation2 + $0x2c0] sm:$0xff]  ;;  %v123_v42 = vld [vmem:[#allocation2 + $0x2e8] sm:$0xff]  ;;  %v3774_v62 = vmov 0.0|0.0  }
  0x30   :  { %297 = vmatprep.subr.mxu1 %v3849_v3  ;;  %v121_v41 = vld [vmem:[#allocation2 + $0x2d8] sm:$0xff]  ;;  %v120_v46 = vld [vmem:[#allocation2 + $0x2d0] sm:$0xff]  ;;  %v122_v47 = vld [vmem:[#allocation2 + $0x2e0] sm:$0xff] }
  0x31   :  { %v3886_v48 = vpack.c.bf16 %v122_v47, %v120_v46  ;;  %v126_v61 = vld [vmem:[#allocation2 + $0x310] sm:$0xff] }
  0x32   :  { %3369 = vmatpush1.bf16.msra.mxu0 %v3368_v11  ;;  %v210_v11 = vsub.s32 0, %v209_v9  ;;  %v3917_v8 = vld [vmem:[#allocation2 + $0x350] ss:$0 sm:$0xff] }
  0x33   :  { %3371 = vmatprep.subr.bf16.mxu0 %v3370_v13  ;;  %298 = vmatpush1.xpose.msra.mxu1 %v3851_v4  ;;  %v47_v13 = vld [vmem:[#allocation2 + $0x80] ss:$8 sm:$0x3] }
  0x34   :  { %v3855_v15 = vrot.slane %v47_v13, %v210_v11  ;;  %v3857_v16 = vrot.slane %v47_v13, %v214_v14  ;;  %382 = vmatprep.subr.mxu1 %v3870_v33 }
  0x36   :  { %3373 = vmatpush1.bf16.msra.mxu0 %v3372_v18 }
  0x37   :  { %3375 = vmatprep.subr.bf16.mxu0 %v3374_v19 }
  0x3a   :  { %3377 = vmatpush1.bf16.msra.mxu0 %v3376_v24 }
  0x3b   :  { %3379 = vmatprep.subr.bf16.mxu0 %v3378_v25 }
  0x3e   :  { %3381 = vmatpush1.bf16.msra.mxu0 %v3380_v30 }
  0x3f   :  { %3383 = vmatprep.subr.bf16.mxu0 %v3382_v31 }
  0x42   :  { %3385 = vmatpush1.bf16.msra.mxu0 %v3384_v36  ;;  %v119_v36 = vld [vmem:[#allocation2 + $0x2c8] sm:$0xff] }
  0x43   :  { %3387 = vmatprep.subr.bf16.mxu0 %v3386_v37  ;;  %v116_v37 = vld [vmem:[#allocation2 + $0x2b0] sm:$0xff]  ;;  %v3876_v38 = vpack.c.bf16 %v119_v36, %v117_v35 }
  0x46   :  { %3389 = vmatpush1.bf16.msra.mxu0 %v3388_v44  ;;  %v3878_v44 = vpack.c.bf16 %v118_v40, %v116_v37 }
  0x47   :  { %3391 = vmatprep.subr.bf16.mxu0 %v3390_v45  ;;  %v3881_v45 = vpack.c.bf16 %v123_v42, %v121_v41 }
  0x4a   :  { %3393 = vmatpush1.bf16.msra.mxu0 %v3392_v50 }
  0x4b   :  { %3395 = vmatprep.subr.bf16.mxu0 %v3394_v53 }
  0x4e   :  { %3397 = vmatpush1.bf16.msra.mxu0 %v3396_v59  ;;  %v124_v59 = vld [vmem:[#allocation2 + $0x2f0] sm:$0xff] }
  0x4f   :  { %3399 = vmatprep.subr.bf16.mxu0 %v3398_v60  ;;  %v125_v60 = vld [vmem:[#allocation2 + $0x300] sm:$0xff] }
  0x52   :  { %3401 = vmatpush1.bf16.msra.mxu0 %v3400_v1  ;;  %v3897_v1 = vpack.c.bf16 %v125_v60, %v124_v59 }
  0x53   :  { %3449 = vmatprep.subr.bf16.mxu0 %v3876_v38 }
  0x55   :  { %201 = vmatmul.mubr.f32.vlgmr.msra.gmra.mrb[0].mxu0 %v3846_v2 }
  0x5b   :  { %3451 = vmatpush1.bf16.xpose.msra.mxu0 %v3878_v44 }
  0x5c   :  { %3453 = vmatprep.subr.bf16.mxu0 %v3881_v45 }
  0x63   :  { %3455 = vmatpush1.bf16.xpose.msra.mxu0 %v3886_v48 }
  0x64   :  { %1142 = vmatprep.subr.mxu0 %v3849_v3 }
 0x100   :  { %v288_v6 = vpop.f32.mrb[0].mxu1 }
 0x101   :  { %v290_v7 = vpop.f32.mrb[1].mxu1  ;;  %v289_v17 = vadd.f32 %v288_v6, %v3855_v15  ;;  %v127_v6 = vld [vmem:[#allocation2 + $0x320] sm:$0xff] }
 0x102   :  { %v291_v18 = vadd.f32 %v290_v7, %v3857_v16  ;;  %v3902_v7 = vpack.c.bf16 %v127_v6, %v126_v61 }
 0x128   :  { %v3861_v19 = vpop.f32.mrb[0].mxu0 }
 0x129   :  { %v293_v20 = vadd.f32 %v289_v17, %v3861_v19  ;;  %v3864_v21 = vpop.f32.mrb[1].mxu0  ;;  %v3776_v17 = vmov 0  }
 0x12a   :  { %v294_v22 = vadd.f32 %v291_v18, %v3864_v21  ;;  %3621 = vset.pattern.permute.xlu1 %v3776_v17  ;;  %3622 = vset.pattern.permute.xlu0 %v3776_v17  ;;  %v3921_v18 = vld [vmem:[#allocation2 + $0x360] ss:$0 sm:$0xff] }
 0x12c   :  { %3623 = vtanh.f32 %v294_v22 }
 0x12d   :  { %3625 = vtanh.f32 %v293_v20  ;;  %v525_v20 = vld [vmem:[%s4260_s1] sm:$0xff] }
 0x12e   :  { %v526_v22 = vmul.f32 %v525_v20, %v3921_v18 }
 0x136   :  { %v3624_v23 = vpop.eup %3623 }
 0x137   :  { %v3626_v24 = vpop.eup %3625  ;;  %361 = vmatprep.mubr.f32.mxu1 %v3624_v23  ;;  %v3927_v23 = vld [vmem:[#allocation2 + $0x370] ss:$0 sm:$0xff] }
 0x138   :  { %362 = vmatmul.mubr.f32.vlgmr.msra.gmra.mrb[2].mxu1 %v3626_v24 }
 0x139   :  { %446 = vmatprep.mubr.f32.mxu1 %v3773_v0  ;;  %383 = vmatpush1.msra.mxu1 %v3873_v34 }
 0x13a   :  { %3419 = vmatprep.subr.bf16.mxu1 %v3876_v38 }
 0x20b   :  { %v363_v25 = vpop.f32.mrb[2].mxu1 }
 0x20c   :  { %v365_v26 = vpop.f32.mrb[3].mxu1  ;;  %v368_v27 = vsel %vm367_vm0, %v363_v25, -inf }
 0x20d   :  { %369 = vmax.xlane.f32.xlu0 %v368_v27 }
 0x29a   :  { %v370_v28 = vpop.xlane.xlu0 %369 }
 0x29b   :  { %v371_v29 = vsub.f32 %v363_v25, %v370_v28 }
 0x29d   :  { %v372_v30 = vmul.f32 1.442695, %v371_v29  ;;  %v3930_v29 = vld [vmem:[#allocation2 + $0x330] ss:$0 sm:$0xff] }
 0x29f   :  { %3627 = vpow2.f32 %v372_v30 }
 0x2a9   :  { %v3628_v31 = vpop.eup %3627 }
 0x2aa   :  { %v374_v32 = vsel %vm367_vm0, %v3628_v31, 0.0 }
 0x2ab   :  { %375 = vadd.xlane.f32.xlu0 %v374_v32  ;;  %v3933_v32 = vld [vmem:[#allocation2 + $0x340] ss:$0 sm:$0xff] }
 0x338   :  { %v376_v49 = vpop.xlane.xlu0 %375 }
 0x339   :  { %3629 = vrcp.f32 %v376_v49 }
 0x343   :  { %v3630_v50 = vpop.eup %3629 }
 0x344   :  { %v378_v53 = vmul.f32 %v3630_v50, %v3628_v31 }
 0x346   :  { %3194 = vmatmul.mubr.msk.f32.vlgmr.msra.gmra.mrb[4].mxu1 %vm367_vm0, %v378_v53 }
 0x347   :  { %3421 = vmatpush1.bf16.xpose.msra.mxu1 %v3878_v44 }
 0x348   :  { %3423 = vmatprep.subr.bf16.mxu1 %v3881_v45 }
 0x34f   :  { %3425 = vmatpush1.bf16.xpose.msra.mxu1 %v3886_v48 }
 0x350   :  { %3426 = vmatprep.subr.bf16.mxu1 %v3774_v62 }
 0x419   :  { %v448_v54 = vpop.f32.mrb[4].mxu1 }
 0x41a   :  { %v450_v55 = vpop.f32.mrb[5].mxu1  ;;  %v453_v57 = vmul.f32 %v448_v54, %v3846_v2 }
 0x41b   :  { %v454_v56 = vmul.f32 %v450_v55, %v3834_v10 }
 0x41d   :  { %519 = vmatprep.mubr.f32.mxu1 %v454_v56 }
 0x41e   :  { %520 = vmatmul.mubr.f32.vlgmr.msra.gmra.mrb[6].mxu1 %v453_v57 }
 0x41f   :  { %3269 = vmatprep.mubr.msk.f32.mxu1 %vm3775_vm1, %v3773_v0  ;;  %3428 = vmatpush3.bf16.msra.mxu1 %v3897_v1 }
 0x420   :  { %3429 = vmatprep.subr.bf16.mxu1 %v3774_v62 }
 0x423   :  { %3431 = vmatpush3.bf16.msra.mxu1 %v3902_v7 }
 0x424   :  { %3433 = vmatprep.subr.bf16.mxu1 %v3812_v39 }
 0x426   :  { %3270 = vmatmul.mubr.f32.vlgmr.msra.gmra.mrb[8].mxu1 %v3773_v0 }
 0x427   :  { %3435 = vmatpush1.bf16.msra.mxu1 %v3814_v43  ;;  %709 = vmatprep.mubr.f32.mxu1 %v3773_v0 }
 0x428   :  { %3437 = vmatprep.subr.bf16.mxu1 %v3818_v51 }
 0x42b   :  { %3439 = vmatpush1.bf16.msra.mxu1 %v3820_v52 }
 0x42c   :  { %3441 = vmatprep.subr.bf16.mxu1 %v3823_v58 }
 0x42f   :  { %3443 = vmatpush1.bf16.msra.mxu1 %v3826_v63 }
 0x430   :  { %3445 = vmatprep.subr.bf16.mxu1 %v3829_v5 }
 0x433   :  { %3447 = vmatpush1.bf16.msra.mxu1 %v3838_v12 }
 0x434   :  { %720 = vmatprep.subr.mxu1 %v3849_v3 }
 0x4f1   :  { %v521_v9 = vpop.f32.mrb[6].mxu1 }
 0x4f2   :  { %v527_v11 = vmul.f32 %v521_v9, %v3917_v8  ;;  %v523_v13 = vpop.f32.mrb[7].mxu1 }
 0x4f4   :  { %v529_v14 = vsel %vm528_vm2, %v527_v11, 0.0 }
 0x4f5   :  { %530 = vadd.xlane.f32.xlu1 %v529_v14 }
 0x4f9   :  { %v608_v27 = vpop.f32.mrb[8].mxu1 }
 0x4fa   :  { %v3271_v28 = vpop.f32.mrb[9].mxu1 }
 0x582   :  { %v531_v24 = vpop.xlane.xlu1 %530 }
 0x583   :  { %v532_v25 = vadd.f32 %v531_v24, %v526_v22 }
 0x585   :  { %v533_v26 = vadd.f32 %v532_v25, %v3927_v23 }
 0x587   :  { %536 = vperm.xlu1 %3621, %v533_v26  }
 0x606   :  { %v537_v30 = vpop.permute.xlu1 %536 }
 0x607   :  { %v539_v31 = vmul.f32 %v537_v30, %v3930_v29 }
 0x609   :  { %v609_v35 = vadd.f32 %v608_v27, %v539_v31 }
 0x60b   :  { %v612_v36 = vadd.f32 %v609_v35, %v3933_v32 }
 0x60d   :  { %3631 = vtanh.f32 %v612_v36  ;;  %v3195_v40 = vmul.f32 -1.442695, %v612_v36 }
 0x60f   :  { %3633 = vpow2.f32 %v3195_v40 }
 0x617   :  { %v3632_v37 = vpop.eup %3631 }
 0x618   :  { %622 = vrot.lane.b32.xlu0 %v3632_v37, %s3777_s4 }
 0x619   :  { %v3634_v41 = vpop.eup %3633 }
 0x61a   :  { %v616_v42 = vadd.f32 1.0, %v3634_v41 }
 0x61c   :  { %3635 = vrcp.f32 %v616_v42 }
 0x626   :  { %v3636_v46 = vpop.eup %3635 }
 0x627   :  { %v620_v50 = vmul.f32 0.0, %v3636_v46 }
 0x68a   :  { %v623_v47 = vpop.permute.xlu0 %622 }
 0x68b   :  { %v625_v49 = vmul.f32 %v3636_v46, %v623_v47 }
 0x68d   :  { %627 = vrot.lane.b32.xlu1 %v625_v49, %s3777_s4 }
 0x6ff   :  { %v628_v53 = vpop.permute.xlu1 %627 }
 0x700   :  { %v3938_v54 = vadd.f32 %v628_v53, %v620_v50 }
 0x702   :  { %3637 = vtanh.f32 %v3938_v54 }
 0x70c   :  { %v3638_v55 = vpop.eup %3637 }
 0x70d   :  { %633 = vrot.lane.b32.xlu1 %v3638_v55, %s3777_s4 }
 0x77f   :  { %v634_v56 = vpop.permute.xlu1 %633 }
 0x780   :  { %v636_v57 = vmul.f32 %v3636_v46, %v634_v56 }
 0x782   :  { %638 = vrot.lane.b32.xlu1 %v636_v57, %s3778_s5  ;;  %v3198_v57 = vld [vmem:[%s4260_s1 + $0x8] sm:$0xff] }
 0x7f4   :  { %v639_v59 = vpop.permute.xlu1 %638 }
 0x7f5   :  { %v641_v60 = vsel %vm528_vm2, %v639_v59, %v3938_v54 }
 0x7f6   :  { %3196 = vmatmul.mubr.msk.f32.vlgmr.msra.gmra.mrb[10].mxu1 %vm218_vm3, %v641_v60 }
 0x7f7   :  { %721 = vmatpush1.xpose.msra.mxu1 %v3851_v4 }
 0x7f8   :  { %804 = vmatprep.subr.mxu1 %v3870_v33 }
 0x8c9   :  { %v711_v61 = vpop.f32.mrb[10].mxu1 }
 0x8ca   :  { %v712_v6 = vadd.f32 %v711_v61, %v3855_v15  ;;  %v713_v9 = vpop.f32.mrb[11].mxu1 }
 0x8cb   :  { %v714_v11 = vadd.f32 %v713_v9, %v3857_v16 }
 0x8cc   :  { %v716_v13 = vadd.f32 %v712_v6, %v3861_v19 }
 0x8cd   :  { %v717_v14 = vadd.f32 %v714_v11, %v3864_v21 }
 0x8cf   :  { %3639 = vtanh.f32 %v717_v14 }
 0x8d0   :  { %3641 = vtanh.f32 %v716_v13 }
 0x8d9   :  { %v3640_v17 = vpop.eup %3639 }
 0x8da   :  { %v3642_v20 = vpop.eup %3641  ;;  %784 = vmatprep.mubr.f32.mxu1 %v3640_v17 }
 0x8db   :  { %785 = vmatmul.mubr.f32.vlgmr.msra.gmra.mrb[12].mxu1 %v3642_v20 }
 0x8dc   :  { %805 = vmatpush1.msra.mxu1 %v3873_v34  ;;  %868 = vmatprep.mubr.f32.mxu1 %v3773_v0 }
 0x8dd   :  { %3456 = vmatprep.subr.bf16.mxu1 %v3774_v62 }
 0x9ae   :  { %v786_v22 = vpop.f32.mrb[12].mxu1 }
 0x9af   :  { %v788_v24 = vpop.f32.mrb[13].mxu1  ;;  %v790_v25 = vsel %vm367_vm0, %v786_v22, -inf }
 0x9b0   :  { %791 = vmax.xlane.f32.xlu0 %v790_v25 }
 0xa3d   :  { %v792_v26 = vpop.xlane.xlu0 %791 }
 0xa3e   :  { %v793_v27 = vsub.f32 %v786_v22, %v792_v26 }
 0xa40   :  { %v794_v28 = vmul.f32 1.442695, %v793_v27 }
 0xa42   :  { %3643 = vpow2.f32 %v794_v28 }
 0xa4c   :  { %v3644_v30 = vpop.eup %3643 }
 0xa4d   :  { %v796_v31 = vsel %vm367_vm0, %v3644_v30, 0.0 }
 0xa4e   :  { %797 = vadd.xlane.f32.xlu1 %v796_v31 }
 0xadb   :  { %v798_v35 = vpop.xlane.xlu1 %797 }
 0xadc   :  { %3645 = vrcp.f32 %v798_v35 }
 0xae6   :  { %v3646_v36 = vpop.eup %3645 }
 0xae7   :  { %v800_v37 = vmul.f32 %v3646_v36, %v3644_v30 }
 0xae9   :  { %3197 = vmatmul.mubr.msk.f32.vlgmr.msra.gmra.mrb[14].mxu1 %vm367_vm0, %v800_v37 }
 0xaea   :  { %3458 = vmatpush3.bf16.msra.mxu1 %v3897_v1  ;;  %3280 = vmatprep.mubr.msk.f32.mxu1 %vm3775_vm1, %v3773_v0 }
 0xaeb   :  { %3459 = vmatprep.subr.bf16.mxu1 %v3774_v62 }
 0xaee   :  { %3461 = vmatpush3.bf16.msra.mxu1 %v3902_v7 }
 0xaef   :  { %3463 = vmatprep.subr.bf16.mxu1 %v3812_v39 }
 0xaf1   :  { %3281 = vmatmul.mubr.msk.f32.vlgmr.msra.gmra.mrb[16].mxu1 %vm528_vm2, %v639_v59  ;;  %v949_v59 = vmul.f32 %v3198_v57, %v3921_v18 }
 0xaf2   :  { %3465 = vmatpush1.bf16.msra.mxu1 %v3814_v43  ;;  %1131 = vmatprep.mubr.f32.mxu1 %v3773_v0 }
 0xaf3   :  { %3467 = vmatprep.subr.bf16.mxu1 %v3818_v51 }
 0xaf6   :  { %3469 = vmatpush1.bf16.msra.mxu1 %v3820_v52 }
 0xaf7   :  { %3471 = vmatprep.subr.bf16.mxu1 %v3823_v58 }
 0xafa   :  { %3473 = vmatpush1.bf16.msra.mxu1 %v3826_v63 }
 0xafb   :  { %3475 = vmatprep.subr.bf16.mxu1 %v3829_v5 }
 0xafe   :  { %3477 = vmatpush1.bf16.msra.mxu1 %v3838_v12 }
 0xaff   :  { %3486 = vmatprep.subr.bf16.mxu1 %v3774_v62 }
 0xbbc   :  { %v870_v40 = vpop.f32.mrb[14].mxu1 }
 0xbbd   :  { %v872_v41 = vpop.f32.mrb[15].mxu1  ;;  %v875_v46 = vmul.f32 %v870_v40, %v3846_v2 }
 0xbbe   :  { %v876_v42 = vmul.f32 %v872_v41, %v3834_v10 }
 0xbc0   :  { %941 = vmatprep.mubr.f32.mxu0 %v876_v42 }
 0xbc1   :  { %942 = vmatmul.mubr.f32.vlgmr.msra.gmra.mrb[2].mxu0 %v875_v46 }
 0xbc2   :  { %1143 = vmatpush1.xpose.msra.mxu0 %v3851_v4 }
 0xbc3   :  { %1226 = vmatprep.subr.mxu0 %v3870_v33 }
 0xbc4   :  { %v1030_v47 = vpop.f32.mrb[16].mxu1 }
 0xbc5   :  { %v3282_v49 = vpop.f32.mrb[17].mxu1 }
 0xc94   :  { %v943_v50 = vpop.f32.mrb[2].mxu0 }
 0xc95   :  { %v950_v53 = vmul.f32 %v943_v50, %v3917_v8  ;;  %v945_v55 = vpop.f32.mrb[3].mxu0 }
 0xc97   :  { %v951_v56 = vsel %vm528_vm2, %v950_v53, 0.0 }
 0xc98   :  { %952 = vadd.xlane.f32.xlu0 %v951_v56 }
 0xd25   :  { %v953_v60 = vpop.xlane.xlu0 %952 }
 0xd26   :  { %v954_v61 = vadd.f32 %v953_v60, %v949_v59 }
 0xd28   :  { %v955_v6 = vadd.f32 %v954_v61, %v3927_v23 }
 0xd2a   :  { %958 = vperm.xlu0 %3622, %v955_v6  }
 0xda9   :  { %v959_v9 = vpop.permute.xlu0 %958 }
 0xdaa   :  { %v961_v11 = vmul.f32 %v959_v9, %v3930_v29 }
 0xdac   :  { %v1031_v13 = vadd.f32 %v1030_v47, %v961_v11 }
 0xdae   :  { %v1034_v14 = vadd.f32 %v1031_v13, %v3933_v32 }
 0xdb0   :  { %3647 = vtanh.f32 %v1034_v14  ;;  %v3200_v20 = vmul.f32 -1.442695, %v1034_v14 }
 0xdb2   :  { %3649 = vpow2.f32 %v3200_v20 }
 0xdba   :  { %v3648_v17 = vpop.eup %3647 }
 0xdbb   :  { %1044 = vrot.lane.b32.xlu1 %v3648_v17, %s3777_s4 }
 0xdbc   :  { %v3650_v22 = vpop.eup %3649 }
 0xdbd   :  { %v1038_v24 = vadd.f32 1.0, %v3650_v22 }
 0xdbf   :  { %3651 = vrcp.f32 %v1038_v24 }
 0xdc9   :  { %v3652_v25 = vpop.eup %3651 }
 0xdca   :  { %v1042_v28 = vmul.f32 %v3652_v25, %v3938_v54 }
 0xe2d   :  { %v1045_v26 = vpop.permute.xlu1 %1044 }
 0xe2e   :  { %v1047_v27 = vmul.f32 %v3652_v25, %v1045_v26 }
 0xe30   :  { %1049 = vrot.lane.b32.xlu1 %v1047_v27, %s3777_s4 }
 0xea2   :  { %v1050_v30 = vpop.permute.xlu1 %1049 }
 0xea3   :  { %v3990_v31 = vadd.f32 %v1050_v30, %v1042_v28 }
 0xea5   :  { %3653 = vtanh.f32 %v3990_v31 }
 0xeaf   :  { %v3654_v35 = vpop.eup %3653 }
 0xeb0   :  { %1055 = vrot.lane.b32.xlu1 %v3654_v35, %s3777_s4 }
 0xf22   :  { %v1056_v36 = vpop.permute.xlu1 %1055 }
 0xf23   :  { %v1058_v37 = vmul.f32 %v3652_v25, %v1056_v36 }
 0xf25   :  { %1060 = vrot.lane.b32.xlu1 %v1058_v37, %s3778_s5  ;;  %v3203_v37 = vld [vmem:[%s4260_s1 + $0x10] sm:$0xff] }
 0xf97   :  { %v1061_v40 = vpop.permute.xlu1 %1060 }
 0xf98   :  { %v1063_v41 = vsel %vm528_vm2, %v1061_v40, %v3990_v31 }
 0xf99   :  { %3201 = vmatmul.mubr.msk.f32.vlgmr.msra.gmra.mrb[18].mxu1 %vm218_vm3, %v1063_v41 }
 0xf9a   :  { %3488 = vmatpush3.bf16.msra.mxu1 %v3897_v1  ;;  %3291 = vmatprep.mubr.msk.f32.mxu1 %vm3775_vm1, %v3773_v0 }
 0xf9b   :  { %3489 = vmatprep.subr.bf16.mxu1 %v3774_v62 }
 0xf9e   :  { %3491 = vmatpush3.bf16.msra.mxu1 %v3902_v7 }
 0xf9f   :  { %3493 = vmatprep.subr.bf16.mxu1 %v3812_v39 }
 0xfa1   :  { %3292 = vmatmul.mubr.msk.f32.vlgmr.msra.gmra.mrb[20].mxu1 %vm528_vm2, %v1061_v40  ;;  %v1371_v40 = vmul.f32 %v3203_v37, %v3921_v18 }
 0xfa2   :  { %3495 = vmatpush1.bf16.msra.mxu1 %v3814_v43  ;;  %1553 = vmatprep.mubr.f32.mxu1 %v3773_v0 }
 0xfa3   :  { %3497 = vmatprep.subr.bf16.mxu1 %v3818_v51 }
 0xfa6   :  { %3499 = vmatpush1.bf16.msra.mxu1 %v3820_v52 }
 0xfa7   :  { %3501 = vmatprep.subr.bf16.mxu1 %v3823_v58 }
 0xfaa   :  { %3503 = vmatpush1.bf16.msra.mxu1 %v3826_v63 }
 0xfab   :  { %3505 = vmatprep.subr.bf16.mxu1 %v3829_v5 }
 0xfae   :  { %3507 = vmatpush1.bf16.msra.mxu1 %v3838_v12 }
 0xfaf   :  { %3516 = vmatprep.subr.bf16.mxu1 %v3774_v62 }
0x106c   :  { %v1133_v54 = vpop.f32.mrb[18].mxu1 }
0x106d   :  { %v1134_v42 = vadd.f32 %v1133_v54, %v3855_v15  ;;  %v1135_v46 = vpop.f32.mrb[19].mxu1 }
0x106e   :  { %v1136_v47 = vadd.f32 %v1135_v46, %v3857_v16 }
0x106f   :  { %v1138_v49 = vadd.f32 %v1134_v42, %v3861_v19 }
0x1070   :  { %v1139_v50 = vadd.f32 %v1136_v47, %v3864_v21 }
0x1072   :  { %3655 = vtanh.f32 %v1139_v50 }
0x1073   :  { %3657 = vtanh.f32 %v1138_v49 }
0x1074   :  { %v1452_v53 = vpop.f32.mrb[20].mxu1 }
0x1075   :  { %v3293_v55 = vpop.f32.mrb[21].mxu1 }
0x107c   :  { %v3656_v56 = vpop.eup %3655 }
0x107d   :  { %v3658_v57 = vpop.eup %3657  ;;  %1206 = vmatprep.mubr.f32.mxu0 %v3656_v56 }
0x107e   :  { %1207 = vmatmul.mubr.f32.vlgmr.msra.gmra.mrb[4].mxu0 %v3658_v57 }
0x107f   :  { %1227 = vmatpush1.msra.mxu0 %v3873_v34  ;;  %1290 = vmatprep.mubr.f32.mxu0 %v3773_v0 }
0x1080   :  { %3479 = vmatprep.subr.bf16.mxu0 %v3876_v38 }
0x1151   :  { %v1208_v59 = vpop.f32.mrb[4].mxu0 }
0x1152   :  { %v1210_v60 = vpop.f32.mrb[5].mxu0  ;;  %v1212_v61 = vsel %vm367_vm0, %v1208_v59, -inf }
0x1153   :  { %1213 = vmax.xlane.f32.xlu1 %v1212_v61 }
0x11e0   :  { %v1214_v6 = vpop.xlane.xlu1 %1213 }
0x11e1   :  { %v1215_v9 = vsub.f32 %v1208_v59, %v1214_v6 }
0x11e3   :  { %v1216_v11 = vmul.f32 1.442695, %v1215_v9 }
0x11e5   :  { %3659 = vpow2.f32 %v1216_v11 }
0x11ef   :  { %v3660_v13 = vpop.eup %3659 }
0x11f0   :  { %v1218_v14 = vsel %vm367_vm0, %v3660_v13, 0.0 }
0x11f1   :  { %1219 = vadd.xlane.f32.xlu0 %v1218_v14 }
0x127e   :  { %v1220_v17 = vpop.xlane.xlu0 %1219 }
0x127f   :  { %3661 = vrcp.f32 %v1220_v17 }
0x1289   :  { %v3662_v20 = vpop.eup %3661 }
0x128a   :  { %v1222_v22 = vmul.f32 %v3662_v20, %v3660_v13 }
0x128c   :  { %3202 = vmatmul.mubr.msk.f32.vlgmr.msra.gmra.mrb[6].mxu0 %vm367_vm0, %v1222_v22 }
0x128d   :  { %3481 = vmatpush1.bf16.xpose.msra.mxu0 %v3878_v44 }
0x128e   :  { %3483 = vmatprep.subr.bf16.mxu0 %v3881_v45 }
0x1295   :  { %3485 = vmatpush1.bf16.xpose.msra.mxu0 %v3886_v48 }
0x1296   :  { %1564 = vmatprep.subr.mxu0 %v3849_v3 }
0x135f   :  { %v1292_v24 = vpop.f32.mrb[6].mxu0 }
0x1360   :  { %v1294_v25 = vpop.f32.mrb[7].mxu0  ;;  %v1297_v27 = vmul.f32 %v1292_v24, %v3846_v2 }
0x1361   :  { %v1298_v26 = vmul.f32 %v1294_v25, %v3834_v10 }
0x1363   :  { %1363 = vmatprep.mubr.f32.mxu0 %v1298_v26 }
0x1364   :  { %1364 = vmatmul.mubr.f32.vlgmr.msra.gmra.mrb[8].mxu0 %v1297_v27 }
0x1365   :  { %1565 = vmatpush1.xpose.msra.mxu0 %v3851_v4 }
0x1366   :  { %1648 = vmatprep.subr.mxu0 %v3870_v33 }
0x1437   :  { %v1365_v28 = vpop.f32.mrb[8].mxu0 }
0x1438   :  { %v1372_v30 = vmul.f32 %v1365_v28, %v3917_v8  ;;  %v1367_v35 = vpop.f32.mrb[9].mxu0 }
0x143a   :  { %v1373_v36 = vsel %vm528_vm2, %v1372_v30, 0.0 }
0x143b   :  { %1374 = vadd.xlane.f32.xlu1 %v1373_v36 }
0x14c8   :  { %v1375_v41 = vpop.xlane.xlu1 %1374 }
0x14c9   :  { %v1376_v54 = vadd.f32 %v1375_v41, %v1371_v40 }
0x14cb   :  { %v1377_v42 = vadd.f32 %v1376_v54, %v3927_v23 }
0x14cd   :  { %1380 = vperm.xlu1 %3621, %v1377_v42  }
0x154c   :  { %v1381_v46 = vpop.permute.xlu1 %1380 }
0x154d   :  { %v1383_v47 = vmul.f32 %v1381_v46, %v3930_v29 }
0x154f   :  { %v1453_v49 = vadd.f32 %v1452_v53, %v1383_v47 }
0x1551   :  { %v1456_v50 = vadd.f32 %v1453_v49, %v3933_v32 }
0x1553   :  { %3663 = vtanh.f32 %v1456_v50  ;;  %v3205_v56 = vmul.f32 -1.442695, %v1456_v50 }
0x1555   :  { %3665 = vpow2.f32 %v3205_v56 }
0x155d   :  { %v3664_v55 = vpop.eup %3663 }
0x155e   :  { %1466 = vrot.lane.b32.xlu0 %v3664_v55, %s3777_s4 }
0x155f   :  { %v3666_v57 = vpop.eup %3665 }
0x1560   :  { %v1460_v59 = vadd.f32 1.0, %v3666_v57 }
0x1562   :  { %3667 = vrcp.f32 %v1460_v59 }
0x156c   :  { %v3668_v60 = vpop.eup %3667 }
0x156d   :  { %v1464_v9 = vmul.f32 %v3668_v60, %v3990_v31 }
0x15d0   :  { %v1467_v61 = vpop.permute.xlu0 %1466 }
0x15d1   :  { %v1469_v6 = vmul.f32 %v3668_v60, %v1467_v61 }
0x15d3   :  { %1471 = vrot.lane.b32.xlu1 %v1469_v6, %s3777_s4 }
0x1645   :  { %v1472_v11 = vpop.permute.xlu1 %1471 }
0x1646   :  { %v4044_v53 = vadd.f32 %v1472_v11, %v1464_v9 }
0x1648   :  { %3669 = vtanh.f32 %v4044_v53 }
0x1652   :  { %v3670_v13 = vpop.eup %3669 }
0x1653   :  { %1477 = vrot.lane.b32.xlu1 %v3670_v13, %s3777_s4 }
0x16c5   :  { %v1478_v14 = vpop.permute.xlu1 %1477 }
0x16c6   :  { %v1480_v17 = vmul.f32 %v3668_v60, %v1478_v14 }
0x16c8   :  { %1482 = vrot.lane.b32.xlu0 %v1480_v17, %s3778_s5  ;;  %v3208_v17 = vld [vmem:[%s4260_s1 + $0x18] sm:$0xff] }
0x173a   :  { %v1483_v20 = vpop.permute.xlu0 %1482 }
0x173b   :  { %v1485_v22 = vsel %vm528_vm2, %v1483_v20, %v4044_v53 }
0x173c   :  { %3206 = vmatmul.mubr.msk.f32.vlgmr.msra.gmra.mrb[22].mxu1 %vm218_vm3, %v1485_v22 }
0x173d   :  { %3518 = vmatpush3.bf16.msra.mxu1 %v3897_v1  ;;  %3302 = vmatprep.mubr.msk.f32.mxu1 %vm3775_vm1, %v3773_v0 }
0x173e   :  { %3519 = vmatprep.subr.bf16.mxu1 %v3774_v62 }
0x1741   :  { %3521 = vmatpush3.bf16.msra.mxu1 %v3902_v7 }
0x1742   :  { %3523 = vmatprep.subr.bf16.mxu1 %v3812_v39 }
0x1744   :  { %3303 = vmatmul.mubr.msk.f32.vlgmr.msra.gmra.mrb[24].mxu1 %vm528_vm2, %v1483_v20 }
0x1745   :  { %3525 = vmatpush1.bf16.msra.mxu1 %v3814_v43  ;;  %1975 = vmatprep.mubr.f32.mxu1 %v3773_v0 }
0x1746   :  { %3527 = vmatprep.subr.bf16.mxu1 %v3818_v51 }
0x1749   :  { %3529 = vmatpush1.bf16.msra.mxu1 %v3820_v52 }
0x174a   :  { %3531 = vmatprep.subr.bf16.mxu1 %v3823_v58 }
0x174d   :  { %3533 = vmatpush1.bf16.msra.mxu1 %v3826_v63 }
0x174e   :  { %3535 = vmatprep.subr.bf16.mxu1 %v3829_v5 }
0x1751   :  { %3537 = vmatpush1.bf16.msra.mxu1 %v3838_v12 }
0x1752   :  { %3546 = vmatprep.subr.bf16.mxu1 %v3774_v62 }
0x180f   :  { %v1555_v31 = vpop.f32.mrb[22].mxu1 }
0x1810   :  { %v1556_v24 = vadd.f32 %v1555_v31, %v3855_v15  ;;  %v1557_v25 = vpop.f32.mrb[23].mxu1 }
0x1811   :  { %v1558_v26 = vadd.f32 %v1557_v25, %v3857_v16 }
0x1812   :  { %v1560_v27 = vadd.f32 %v1556_v24, %v3861_v19 }
0x1813   :  { %v1561_v28 = vadd.f32 %v1558_v26, %v3864_v21 }
0x1815   :  { %3671 = vtanh.f32 %v1561_v28 }
0x1816   :  { %3673 = vtanh.f32 %v1560_v27 }
0x1817   :  { %v1874_v30 = vpop.f32.mrb[24].mxu1 }
0x1818   :  { %v3304_v35 = vpop.f32.mrb[25].mxu1 }
0x181f   :  { %v3672_v36 = vpop.eup %3671 }
0x1820   :  { %v3674_v37 = vpop.eup %3673  ;;  %1628 = vmatprep.mubr.f32.mxu0 %v3672_v36 }
0x1821   :  { %1629 = vmatmul.mubr.f32.vlgmr.msra.gmra.mrb[10].mxu0 %v3674_v37 }
0x1822   :  { %1649 = vmatpush1.msra.mxu0 %v3873_v34  ;;  %1712 = vmatprep.mubr.f32.mxu0 %v3773_v0 }
0x1823   :  { %3509 = vmatprep.subr.bf16.mxu0 %v3876_v38 }
0x18f4   :  { %v1630_v40 = vpop.f32.mrb[10].mxu0 }
0x18f5   :  { %v1632_v41 = vpop.f32.mrb[11].mxu0  ;;  %v1634_v54 = vsel %vm367_vm0, %v1630_v40, -inf }
0x18f6   :  { %1635 = vmax.xlane.f32.xlu1 %v1634_v54 }
0x1983   :  { %v1636_v42 = vpop.xlane.xlu1 %1635 }
0x1984   :  { %v1637_v46 = vsub.f32 %v1630_v40, %v1636_v42 }
0x1986   :  { %v1638_v47 = vmul.f32 1.442695, %v1637_v46 }
0x1988   :  { %3675 = vpow2.f32 %v1638_v47 }
0x1992   :  { %v3676_v49 = vpop.eup %3675 }
0x1993   :  { %v1640_v50 = vsel %vm367_vm0, %v3676_v49, 0.0 }
0x1994   :  { %1641 = vadd.xlane.f32.xlu0 %v1640_v50 }
0x1a21   :  { %v1642_v55 = vpop.xlane.xlu0 %1641 }
0x1a22   :  { %3677 = vrcp.f32 %v1642_v55 }
0x1a2c   :  { %v3678_v56 = vpop.eup %3677 }
0x1a2d   :  { %v1644_v57 = vmul.f32 %v3678_v56, %v3676_v49 }
0x1a2f   :  { %3207 = vmatmul.mubr.msk.f32.vlgmr.msra.gmra.mrb[12].mxu0 %vm367_vm0, %v1644_v57 }
0x1a30   :  { %3511 = vmatpush1.bf16.xpose.msra.mxu0 %v3878_v44 }
0x1a31   :  { %3513 = vmatprep.subr.bf16.mxu0 %v3881_v45 }
0x1a38   :  { %3515 = vmatpush1.bf16.xpose.msra.mxu0 %v3886_v48 }
0x1a39   :  { %1986 = vmatprep.subr.mxu0 %v3849_v3 }
0x1b02   :  { %v1714_v59 = vpop.f32.mrb[12].mxu0 }
0x1b03   :  { %v1716_v60 = vpop.f32.mrb[13].mxu0  ;;  %v1719_v6 = vmul.f32 %v1714_v59, %v3846_v2 }
0x1b04   :  { %v1720_v61 = vmul.f32 %v1716_v60, %v3834_v10  ;;  %v1793_v10 = vmul.f32 %v3208_v17, %v3921_v18 }
0x1b06   :  { %1785 = vmatprep.mubr.f32.mxu0 %v1720_v61 }
0x1b07   :  { %1786 = vmatmul.mubr.f32.vlgmr.msra.gmra.mrb[14].mxu0 %v1719_v6 }
0x1b08   :  { %1987 = vmatpush1.xpose.msra.mxu0 %v3851_v4 }
0x1b09   :  { %2070 = vmatprep.subr.mxu0 %v3870_v33 }
0x1bda   :  { %v1787_v9 = vpop.f32.mrb[14].mxu0 }
0x1bdb   :  { %v1794_v11 = vmul.f32 %v1787_v9, %v3917_v8  ;;  %v1789_v13 = vpop.f32.mrb[15].mxu0 }
0x1bdd   :  { %v1795_v14 = vsel %vm528_vm2, %v1794_v11, 0.0 }
0x1bde   :  { %1796 = vadd.xlane.f32.xlu0 %v1795_v14 }
0x1c6b   :  { %v1797_v20 = vpop.xlane.xlu0 %1796 }
0x1c6c   :  { %v1798_v22 = vadd.f32 %v1797_v20, %v1793_v10 }
0x1c6e   :  { %v1799_v31 = vadd.f32 %v1798_v22, %v3927_v23 }
0x1c70   :  { %1802 = vperm.xlu1 %3621, %v1799_v31  }
0x1cef   :  { %v1803_v24 = vpop.permute.xlu1 %1802 }
0x1cf0   :  { %v1805_v25 = vmul.f32 %v1803_v24, %v3930_v29 }
0x1cf2   :  { %v1875_v26 = vadd.f32 %v1874_v30, %v1805_v25 }
0x1cf4   :  { %v1878_v27 = vadd.f32 %v1875_v26, %v3933_v32 }
0x1cf6   :  { %3679 = vtanh.f32 %v1878_v27  ;;  %v3210_v35 = vmul.f32 -1.442695, %v1878_v27 }
0x1cf8   :  { %3681 = vpow2.f32 %v3210_v35 }
0x1d00   :  { %v3680_v28 = vpop.eup %3679 }
0x1d01   :  { %1888 = vrot.lane.b32.xlu0 %v3680_v28, %s3777_s4 }
0x1d02   :  { %v3682_v36 = vpop.eup %3681 }
0x1d03   :  { %v1882_v37 = vadd.f32 1.0, %v3682_v36 }
0x1d05   :  { %3683 = vrcp.f32 %v1882_v37  ;;  %v4139_v37 = vld [vmem:[%s4259_s0 + $0x8] sm:$0xff] }
0x1d0f   :  { %v3684_v40 = vpop.eup %3683 }
0x1d10   :  { %v1886_v42 = vmul.f32 %v3684_v40, %v4044_v53 }
0x1d73   :  { %v1889_v41 = vpop.permute.xlu0 %1888 }
0x1d74   :  { %v1891_v54 = vmul.f32 %v3684_v40, %v1889_v41 }
0x1d76   :  { %1893 = vrot.lane.b32.xlu1 %v1891_v54, %s3777_s4 }
0x1de8   :  { %v1894_v46 = vpop.permute.xlu1 %1893 }
0x1de9   :  { %v4098_v30 = vadd.f32 %v1894_v46, %v1886_v42 }
0x1deb   :  { %3685 = vtanh.f32 %v4098_v30 }
0x1df5   :  { %v3686_v47 = vpop.eup %3685 }
0x1df6   :  { %1899 = vrot.lane.b32.xlu1 %v3686_v47, %s3777_s4  ;;  %v3213_v47 = vld [vmem:[%s4260_s1 + $0x20] sm:$0xff] }
0x1e68   :  { %v1900_v49 = vpop.permute.xlu1 %1899 }
0x1e69   :  { %v1902_v50 = vmul.f32 %v3684_v40, %v1900_v49  ;;  %v2215_v49 = vmul.f32 %v3213_v47, %v3921_v18  ;;  %v3737_v47 = vld [vmem:[#allocation2 + $0x298] sm:$0xff] }
0x1e6b   :  { %1904 = vrot.lane.b32.xlu0 %v1902_v50, %s3778_s5 }
0x1edd   :  { %v1905_v55 = vpop.permute.xlu0 %1904 }
0x1ede   :  { %v1907_v56 = vsel %vm528_vm2, %v1905_v55, %v4098_v30 }
0x1edf   :  { %3211 = vmatmul.mubr.msk.f32.vlgmr.msra.gmra.mrb[26].mxu1 %vm218_vm3, %v1907_v56 }
0x1ee0   :  { %3548 = vmatpush3.bf16.msra.mxu1 %v3897_v1  ;;  %3313 = vmatprep.mubr.msk.f32.mxu1 %vm3775_vm1, %v3773_v0 }
0x1ee1   :  { %3549 = vmatprep.subr.bf16.mxu1 %v3774_v62 }
0x1ee4   :  { %3551 = vmatpush3.bf16.msra.mxu1 %v3902_v7 }
0x1ee5   :  { %3553 = vmatprep.subr.bf16.mxu1 %v3812_v39 }
0x1ee7   :  { %3314 = vmatmul.mubr.msk.f32.vlgmr.msra.gmra.mrb[28].mxu1 %vm528_vm2, %v1905_v55 }
0x1ee8   :  { %3555 = vmatpush1.bf16.msra.mxu1 %v3814_v43  ;;  %2397 = vmatprep.mubr.f32.mxu1 %v3773_v0 }
0x1ee9   :  { %3557 = vmatprep.subr.bf16.mxu1 %v3818_v51 }
0x1eec   :  { %3559 = vmatpush1.bf16.msra.mxu1 %v3820_v52 }
0x1eed   :  { %3561 = vmatprep.subr.bf16.mxu1 %v3823_v58 }
0x1ef0   :  { %3563 = vmatpush1.bf16.msra.mxu1 %v3826_v63 }
0x1ef1   :  { %3565 = vmatprep.subr.bf16.mxu1 %v3829_v5 }
0x1ef4   :  { %3567 = vmatpush1.bf16.msra.mxu1 %v3838_v12 }
0x1ef5   :  { %3576 = vmatprep.subr.bf16.mxu1 %v3774_v62 }
0x1fb2   :  { %v1977_v53 = vpop.f32.mrb[26].mxu1 }
0x1fb3   :  { %v1978_v57 = vadd.f32 %v1977_v53, %v3855_v15  ;;  %v1979_v59 = vpop.f32.mrb[27].mxu1 }
0x1fb4   :  { %v1980_v60 = vadd.f32 %v1979_v59, %v3857_v16 }
0x1fb5   :  { %v1982_v61 = vadd.f32 %v1978_v57, %v3861_v19 }
0x1fb6   :  { %v1983_v6 = vadd.f32 %v1980_v60, %v3864_v21 }
0x1fb8   :  { %3687 = vtanh.f32 %v1983_v6 }
0x1fb9   :  { %3689 = vtanh.f32 %v1982_v61 }
0x1fba   :  { %v2296_v9 = vpop.f32.mrb[28].mxu1 }
0x1fbb   :  { %v3315_v11 = vpop.f32.mrb[29].mxu1 }
0x1fc2   :  { %v3688_v13 = vpop.eup %3687 }
0x1fc3   :  { %v3690_v14 = vpop.eup %3689  ;;  %2050 = vmatprep.mubr.f32.mxu0 %v3688_v13 }
0x1fc4   :  { %2051 = vmatmul.mubr.f32.vlgmr.msra.gmra.mrb[16].mxu0 %v3690_v14 }
0x1fc5   :  { %2071 = vmatpush1.msra.mxu0 %v3873_v34  ;;  %2134 = vmatprep.mubr.f32.mxu0 %v3773_v0 }
0x1fc6   :  { %3539 = vmatprep.subr.bf16.mxu0 %v3876_v38 }
0x2097   :  { %v2052_v17 = vpop.f32.mrb[16].mxu0 }
0x2098   :  { %v2054_v10 = vpop.f32.mrb[17].mxu0  ;;  %v2056_v20 = vsel %vm367_vm0, %v2052_v17, -inf }
0x2099   :  { %2057 = vmax.xlane.f32.xlu1 %v2056_v20 }
0x2126   :  { %v2058_v22 = vpop.xlane.xlu1 %2057 }
0x2127   :  { %v2059_v31 = vsub.f32 %v2052_v17, %v2058_v22 }
0x2129   :  { %v2060_v24 = vmul.f32 1.442695, %v2059_v31 }
0x212b   :  { %3691 = vpow2.f32 %v2060_v24 }
0x2135   :  { %v3692_v25 = vpop.eup %3691 }
0x2136   :  { %v2062_v26 = vsel %vm367_vm0, %v3692_v25, 0.0 }
0x2137   :  { %2063 = vadd.xlane.f32.xlu0 %v2062_v26 }
0x21c4   :  { %v2064_v27 = vpop.xlane.xlu0 %2063 }
0x21c5   :  { %3693 = vrcp.f32 %v2064_v27 }
0x21cf   :  { %v3694_v34 = vpop.eup %3693 }
0x21d0   :  { %v2066_v28 = vmul.f32 %v3694_v34, %v3692_v25 }
0x21d2   :  { %3212 = vmatmul.mubr.msk.f32.vlgmr.msra.gmra.mrb[18].mxu0 %vm367_vm0, %v2066_v28 }
0x21d3   :  { %3541 = vmatpush1.bf16.xpose.msra.mxu0 %v3878_v44 }
0x21d4   :  { %3543 = vmatprep.subr.bf16.mxu0 %v3881_v45 }
0x21db   :  { %3545 = vmatpush1.bf16.xpose.msra.mxu0 %v3886_v48 }
0x21dc   :  { %2408 = vmatprep.subr.mxu0 %v3849_v3 }
0x22a5   :  { %v2136_v35 = vpop.f32.mrb[18].mxu0 }
0x22a6   :  { %v2138_v36 = vpop.f32.mrb[19].mxu0  ;;  %v2141_v41 = vmul.f32 %v2136_v35, %v3846_v2 }
0x22a7   :  { %v2142_v40 = vmul.f32 %v4139_v37, %v2138_v36 }
0x22a9   :  { %2207 = vmatprep.mubr.f32.mxu0 %v2142_v40 }
0x22aa   :  { %2208 = vmatmul.mubr.f32.vlgmr.msra.gmra.mrb[20].mxu0 %v2141_v41 }
0x22ab   :  { %2409 = vmatpush1.xpose.msra.mxu0 %v3851_v4 }
0x22ac   :  { %2492 = vmatprep.subr.mxu0 %v3870_v33 }
0x237d   :  { %v2209_v54 = vpop.f32.mrb[20].mxu0 }
0x237e   :  { %v2216_v3 = vmul.f32 %v2209_v54, %v3917_v8  ;;  %v2211_v42 = vpop.f32.mrb[21].mxu0 }
0x2380   :  { %v2217_v46 = vsel %vm528_vm2, %v2216_v3, 0.0 }
0x2381   :  { %2218 = vadd.xlane.f32.xlu0 %v2217_v46 }
0x240e   :  { %v2219_v2 = vpop.xlane.xlu0 %2218 }
0x240f   :  { %v2220_v50 = vadd.f32 %v2219_v2, %v2215_v49 }
0x2411   :  { %v2221_v55 = vadd.f32 %v2220_v50, %v3927_v23 }
0x2413   :  { %2224 = vperm.xlu1 %3621, %v2221_v55   ;;  %v4200_v55 = vld [vmem:[%s4259_s0] sm:$0xff] }
0x2492   :  { %v2225_v4 = vpop.permute.xlu1 %2224 }
0x2493   :  { %v2227_v33 = vmul.f32 %v2225_v4, %v3930_v29 }
0x2495   :  { %v2297_v56 = vadd.f32 %v2296_v9, %v2227_v33  ;;  %v3739_v33 = vld [vmem:[#allocation2 + $0x290] sm:$0xff] }
0x2497   :  { %v2300_v53 = vadd.f32 %v2297_v56, %v3933_v32  ;;  %v3740_v56 = vld [vmem:[#allocation2 + $0x2a8] sm:$0xff] }
0x2499   :  { %3695 = vtanh.f32 %v2300_v53  ;;  %v3215_v59 = vmul.f32 -1.442695, %v2300_v53 }
0x249b   :  { %3697 = vpow2.f32 %v3215_v59 }
0x24a3   :  { %v3696_v57 = vpop.eup %3695 }
0x24a4   :  { %2310 = vrot.lane.b32.xlu0 %v3696_v57, %s3777_s4 }
0x24a5   :  { %v3698_v60 = vpop.eup %3697 }
0x24a6   :  { %v2304_v61 = vadd.f32 1.0, %v3698_v60 }
0x24a8   :  { %3699 = vrcp.f32 %v2304_v61  ;;  %v3218_v61 = vld [vmem:[%s4260_s1 + $0x28] sm:$0xff] }
0x24b2   :  { %v3700_v6 = vpop.eup %3699 }
0x24b3   :  { %v2308_v14 = vmul.f32 %v3700_v6, %v4098_v30 }
0x2516   :  { %v2311_v11 = vpop.permute.xlu0 %2310 }
0x2517   :  { %v2313_v13 = vmul.f32 %v3700_v6, %v2311_v11 }
0x2519   :  { %2315 = vrot.lane.b32.xlu1 %v2313_v13, %s3777_s4 }
0x258b   :  { %v2316_v17 = vpop.permute.xlu1 %2315 }
0x258c   :  { %v4157_v9 = vadd.f32 %v2316_v17, %v2308_v14 }
0x258e   :  { %3701 = vtanh.f32 %v4157_v9 }
0x2598   :  { %v3702_v10 = vpop.eup %3701 }
0x2599   :  { %2321 = vrot.lane.b32.xlu1 %v3702_v10, %s3777_s4 }
0x260b   :  { %v2322_v20 = vpop.permute.xlu1 %2321 }
0x260c   :  { %v2324_v22 = vmul.f32 %v3700_v6, %v2322_v20  ;;  %v2637_v6 = vmul.f32 %v3218_v61, %v3921_v18 }
0x260e   :  { %2326 = vrot.lane.b32.xlu0 %v2324_v22, %s3778_s5 }
0x2680   :  { %v2327_v31 = vpop.permute.xlu0 %2326 }
0x2681   :  { %v2329_v24 = vsel %vm528_vm2, %v2327_v31, %v4157_v9 }
0x2682   :  { %3216 = vmatmul.mubr.msk.f32.vlgmr.msra.gmra.mrb[30].mxu1 %vm218_vm3, %v2329_v24 }
0x2683   :  { %3578 = vmatpush3.bf16.msra.mxu1 %v3897_v1  ;;  %3324 = vmatprep.mubr.msk.f32.mxu1 %vm3775_vm1, %v3773_v0 }
0x2684   :  { %3579 = vmatprep.subr.bf16.mxu1 %v3774_v62 }
0x2687   :  { %3581 = vmatpush3.bf16.msra.mxu1 %v3902_v7 }
0x2688   :  { %3583 = vmatprep.subr.bf16.mxu1 %v3812_v39 }
0x268a   :  { %3325 = vmatmul.mubr.msk.f32.vlgmr.msra.gmra.mrb[32].mxu1 %vm528_vm2, %v2327_v31 }
0x268b   :  { %3585 = vmatpush1.bf16.msra.mxu1 %v3814_v43  ;;  %2819 = vmatprep.mubr.f32.mxu1 %v3773_v0 }
0x268c   :  { %3587 = vmatprep.subr.bf16.mxu1 %v3818_v51 }
0x268f   :  { %3589 = vmatpush1.bf16.msra.mxu1 %v3820_v52 }
0x2690   :  { %3591 = vmatprep.subr.bf16.mxu1 %v3823_v58 }
0x2693   :  { %3593 = vmatpush1.bf16.msra.mxu1 %v3826_v63 }
0x2694   :  { %3595 = vmatprep.subr.bf16.mxu1 %v3829_v5 }
0x2697   :  { %3597 = vmatpush1.bf16.msra.mxu1 %v3838_v12  ;;  %v4185_v12 = vld [vmem:[#allocation2 + $0x2a0] sm:$0xff] }
0x2698   :  { %3606 = vmatprep.subr.bf16.mxu1 %v3774_v62 }
0x2755   :  { %v2399_v39 = vpop.f32.mrb[30].mxu1 }
0x2756   :  { %v2400_v30 = vadd.f32 %v2399_v39, %v3855_v15  ;;  %v2401_v43 = vpop.f32.mrb[31].mxu1 }
0x2757   :  { %v2402_v25 = vadd.f32 %v2401_v43, %v3857_v16 }
0x2758   :  { %v2404_v51 = vadd.f32 %v2400_v30, %v3861_v19 }
0x2759   :  { %v2405_v52 = vadd.f32 %v2402_v25, %v3864_v21 }
0x275b   :  { %3703 = vtanh.f32 %v2405_v52 }
0x275c   :  { %3705 = vtanh.f32 %v2404_v51 }
0x275d   :  { %v2718_v58 = vpop.f32.mrb[32].mxu1 }
0x275e   :  { %v3326_v63 = vpop.f32.mrb[33].mxu1 }
0x2765   :  { %v3704_v26 = vpop.eup %3703 }
0x2766   :  { %v3706_v5 = vpop.eup %3705  ;;  %2472 = vmatprep.mubr.f32.mxu0 %v3704_v26 }
0x2767   :  { %2473 = vmatmul.mubr.f32.vlgmr.msra.gmra.mrb[22].mxu0 %v3706_v5 }
0x2768   :  { %2493 = vmatpush1.msra.mxu0 %v4185_v12  ;;  %2556 = vmatprep.mubr.f32.mxu0 %v3773_v0 }
0x2769   :  { %3569 = vmatprep.subr.bf16.mxu0 %v3876_v38 }
0x283a   :  { %v2474_v27 = vpop.f32.mrb[22].mxu0 }
0x283b   :  { %v2476_v34 = vpop.f32.mrb[23].mxu0  ;;  %v2478_v28 = vsel %vm367_vm0, %v2474_v27, -inf }
0x283c   :  { %2479 = vmax.xlane.f32.xlu1 %v2478_v28 }
0x28c9   :  { %v2480_v35 = vpop.xlane.xlu1 %2479 }
0x28ca   :  { %v2481_v36 = vsub.f32 %v2474_v27, %v2480_v35 }
0x28cc   :  { %v2482_v40 = vmul.f32 1.442695, %v2481_v36 }
0x28ce   :  { %3707 = vpow2.f32 %v2482_v40 }
0x28d8   :  { %v3708_v41 = vpop.eup %3707 }
0x28d9   :  { %v2484_v54 = vsel %vm367_vm0, %v3708_v41, 0.0 }
0x28da   :  { %2485 = vadd.xlane.f32.xlu0 %v2484_v54 }
0x2967   :  { %v2486_v3 = vpop.xlane.xlu0 %2485 }
0x2968   :  { %3709 = vrcp.f32 %v2486_v3 }
0x2972   :  { %v3710_v42 = vpop.eup %3709 }
0x2973   :  { %v2488_v46 = vmul.f32 %v3710_v42, %v3708_v41 }
0x2975   :  { %3217 = vmatmul.mubr.msk.f32.vlgmr.msra.gmra.mrb[24].mxu0 %vm367_vm0, %v2488_v46 }
0x2976   :  { %3571 = vmatpush1.bf16.xpose.msra.mxu0 %v3878_v44 }
0x2977   :  { %3573 = vmatprep.subr.bf16.mxu0 %v3881_v45 }
0x297e   :  { %3575 = vmatpush1.bf16.xpose.msra.mxu0 %v3886_v48 }
0x297f   :  { %2830 = vmatprep.subr.mxu0 %v3737_v47 }
0x2a48   :  { %v2558_v49 = vpop.f32.mrb[24].mxu0 }
0x2a49   :  { %v2560_v2 = vpop.f32.mrb[25].mxu0  ;;  %v2563_v4 = vmul.f32 %v4200_v55, %v2558_v49 }
0x2a4a   :  { %v2564_v50 = vmul.f32 %v4139_v37, %v2560_v2  ;;  %v3741_v2 = vld [vmem:[#allocation2 + $0x350] ss:$0 sm:$0xff] }
0x2a4c   :  { %2629 = vmatprep.mubr.f32.mxu0 %v2564_v50 }
0x2a4d   :  { %2630 = vmatmul.mubr.f32.vlgmr.msra.gmra.mrb[26].mxu0 %v2563_v4 }
0x2a4e   :  { %2831 = vmatpush1.xpose.msra.mxu0 %v3739_v33 }
0x2a4f   :  { %2914 = vmatprep.subr.mxu0 %v3740_v56 }
0x2b20   :  { %v2631_v53 = vpop.f32.mrb[26].mxu0 }
0x2b21   :  { %v2638_v57 = vmul.f32 %v2631_v53, %v3917_v8  ;;  %v2633_v59 = vpop.f32.mrb[27].mxu0 }
0x2b22   :  { %v3744_v59 = vld [vmem:[#allocation2 + $0x330] ss:$0 sm:$0xff] }
0x2b23   :  { %v2639_v60 = vsel %vm528_vm2, %v2638_v57, 0.0 }
0x2b24   :  { %2640 = vadd.xlane.f32.xlu0 %v2639_v60 }
0x2bb1   :  { %v2641_v11 = vpop.xlane.xlu0 %2640 }
0x2bb2   :  { %v2642_v13 = vadd.f32 %v2641_v11, %v2637_v6  ;;  %v3745_v6 = vld [vmem:[#allocation2 + $0x340] ss:$0 sm:$0xff] }
0x2bb4   :  { %v2643_v14 = vadd.f32 %v2642_v13, %v3927_v23 }
0x2bb6   :  { %2646 = vperm.xlu1 %3621, %v2643_v14  }
0x2c35   :  { %v2647_v17 = vpop.permute.xlu1 %2646 }
0x2c36   :  { %v2649_v10 = vmul.f32 %v2647_v17, %v3930_v29 }
0x2c38   :  { %v2719_v20 = vadd.f32 %v2718_v58, %v2649_v10 }
0x2c3a   :  { %v2722_v8 = vadd.f32 %v2719_v20, %v3933_v32 }
0x2c3c   :  { %3711 = vtanh.f32 %v2722_v8  ;;  %v3220_v31 = vmul.f32 -1.442695, %v2722_v8 }
0x2c3e   :  { %3713 = vpow2.f32 %v3220_v31  ;;  %v133_v31 = vld [vmem:[#allocation2 + $0x380] ss:$0 sm:$0xff] }
0x2c46   :  { %v3712_v22 = vpop.eup %3711 }
0x2c47   :  { %2732 = vrot.lane.b32.xlu0 %v3712_v22, %s3777_s4 }
0x2c48   :  { %v3714_v24 = vpop.eup %3713 }
0x2c49   :  { %v2726_v39 = vadd.f32 1.0, %v3714_v24 }
0x2c4b   :  { %3715 = vrcp.f32 %v2726_v39 }
0x2c55   :  { %v3716_v18 = vpop.eup %3715 }
0x2c56   :  { %v2730_v23 = vmul.f32 %v3716_v18, %v4157_v9 }
0x2cb9   :  { %v2733_v30 = vpop.permute.xlu0 %2732 }
0x2cba   :  { %v2735_v43 = vmul.f32 %v3716_v18, %v2733_v30 }
0x2cbc   :  { %2737 = vrot.lane.b32.xlu1 %v2735_v43, %s3777_s4 }
0x2d2e   :  { %v2738_v29 = vpop.permute.xlu1 %2737 }
0x2d2f   :  { %v4215_v25 = vadd.f32 %v2738_v29, %v2730_v23 }
0x2d31   :  { %3717 = vtanh.f32 %v4215_v25 }
0x2d3b   :  { %v3718_v32 = vpop.eup %3717 }
0x2d3c   :  { %2743 = vrot.lane.b32.xlu1 %v3718_v32, %s3777_s4 }
0x2dae   :  { %v2744_v51 = vpop.permute.xlu1 %2743 }
0x2daf   :  { %v2746_v52 = vmul.f32 %v3716_v18, %v2744_v51  ;;  %v134_v51 = vld [vmem:[#allocation2 + $0x390] ss:$0 sm:$0xff] }
0x2db1   :  { %2748 = vrot.lane.b32.xlu0 %v2746_v52, %s3778_s5 }
0x2e23   :  { %v2749_v58 = vpop.permute.xlu0 %2748 }
0x2e24   :  { %v2751_v63 = vsel %vm528_vm2, %v2749_v58, %v4215_v25 }
0x2e25   :  { %3221 = vmatmul.mubr.msk.f32.vlgmr.msra.gmra.mrb[34].mxu1 %vm218_vm3, %v2751_v63 }
0x2e26   :  { %3608 = vmatpush3.bf16.msra.mxu1 %v3897_v1  ;;  %3335 = vmatprep.mubr.msk.f32.mxu1 %vm3775_vm1, %v3773_v0 }
0x2e27   :  { %3609 = vmatprep.subr.bf16.mxu1 %v3774_v62 }
0x2e2a   :  { %3611 = vmatpush3.bf16.msra.mxu1 %v3902_v7 }
0x2e2d   :  { %3336 = vmatmul.mubr.msk.f32.vlgmr.msra.gmra.mrb[36].mxu1 %vm528_vm2, %v2749_v58 }
0x2ef8   :  { %v2821_v9 = vpop.f32.mrb[34].mxu1 }
0x2ef9   :  { %v2822_v26 = vadd.f32 %v2821_v9, %v3855_v15  ;;  %v2823_v5 = vpop.f32.mrb[35].mxu1 }
0x2efa   :  { %v2824_v27 = vadd.f32 %v2823_v5, %v3857_v16 }
0x2efb   :  { %v2826_v34 = vadd.f32 %v2822_v26, %v3861_v19  ;;  %v135_v26 = vld [vmem:[#allocation2 + $0x3a0] ss:$0 sm:$0xff] }
0x2efc   :  { %v2827_v28 = vadd.f32 %v2824_v27, %v3864_v21 }
0x2efe   :  { %3719 = vtanh.f32 %v2827_v28 }
0x2eff   :  { %3721 = vtanh.f32 %v2826_v34 }
0x2f00   :  { %v3140_v1 = vpop.f32.mrb[36].mxu1 }
0x2f01   :  { %v3337_v35 = vpop.f32.mrb[37].mxu1 }
0x2f08   :  { %v3720_v36 = vpop.eup %3719 }
0x2f09   :  { %v3722_v62 = vpop.eup %3721  ;;  %2894 = vmatprep.mubr.f32.mxu0 %v3720_v36 }
0x2f0a   :  { %2895 = vmatmul.mubr.f32.vlgmr.msra.gmra.mrb[28].mxu0 %v3722_v62 }
0x2f0b   :  { %2915 = vmatpush1.msra.mxu0 %v4185_v12  ;;  %2978 = vmatprep.mubr.f32.mxu0 %v3773_v0 }
0x2f0c   :  { %3599 = vmatprep.subr.bf16.mxu0 %v3876_v38 }
0x2fdd   :  { %v2896_v15 = vpop.f32.mrb[28].mxu0 }
0x2fde   :  { %v2898_v16 = vpop.f32.mrb[29].mxu0  ;;  %v2900_v19 = vsel %vm367_vm0, %v2896_v15, -inf }
0x2fdf   :  { %2901 = vmax.xlane.f32.xlu1 %v2900_v19 }
0x306c   :  { %v2902_v21 = vpop.xlane.xlu1 %2901 }
0x306d   :  { %v2903_v7 = vsub.f32 %v2896_v15, %v2902_v21 }
0x306f   :  { %v2904_v40 = vmul.f32 1.442695, %v2903_v7 }
0x3071   :  { %3723 = vpow2.f32 %v2904_v40 }
0x307b   :  { %v3724_v41 = vpop.eup %3723 }
0x307c   :  { %v2906_v54 = vsel %vm367_vm0, %v3724_v41, 0.0 }
0x307d   :  { %2907 = vadd.xlane.f32.xlu0 %v2906_v54 }
0x310a   :  { %v2908_v3 = vpop.xlane.xlu0 %2907 }
0x310b   :  { %3725 = vrcp.f32 %v2908_v3 }
0x3115   :  { %v3726_v12 = vpop.eup %3725 }
0x3116   :  { %v2910_v42 = vmul.f32 %v3726_v12, %v3724_v41 }
0x3118   :  { %3222 = vmatmul.mubr.msk.f32.vlgmr.msra.gmra.mrb[30].mxu0 %vm367_vm0, %v2910_v42 }
0x3119   :  { %3601 = vmatpush1.bf16.xpose.msra.mxu0 %v3878_v44  ;;  %v3223_v44 = vld [vmem:[%s4260_s1 + $0x30] sm:$0xff] }
0x311a   :  { %3603 = vmatprep.subr.bf16.mxu0 %v3881_v45  ;;  %v3742_v45 = vld [vmem:[#allocation2 + $0x360] ss:$0 sm:$0xff] }
0x3121   :  { %3605 = vmatpush1.bf16.xpose.msra.mxu0 %v3886_v48  ;;  %v3059_v48 = vmul.f32 %v3742_v45, %v3223_v44 }
0x31eb   :  { %v2980_v0 = vpop.f32.mrb[30].mxu0 }
0x31ec   :  { %v2982_v38 = vpop.f32.mrb[31].mxu0  ;;  %v2985_v47 = vmul.f32 %v4200_v55, %v2980_v0 }
0x31ed   :  { %v2986_v46 = vmul.f32 %v4139_v37, %v2982_v38  ;;  %v3743_v37 = vld [vmem:[#allocation2 + $0x370] ss:$0 sm:$0xff] }
0x31ef   :  { %3051 = vmatprep.mubr.f32.mxu0 %v2986_v46 }
0x31f0   :  { %3052 = vmatmul.mubr.f32.vlgmr.msra.gmra.mrb[32].mxu0 %v2985_v47 }
0x32c3   :  { %v3053_v49 = vpop.f32.mrb[32].mxu0 }
0x32c4   :  { %v3060_v50 = vmul.f32 %v3741_v2, %v3053_v49  ;;  %v3055_v4 = vpop.f32.mrb[33].mxu0  ;;  %v3181_v52 = vmul.f32 %v3053_v49, %v134_v51 }
0x32c6   :  { %v3061_v33 = vsel %vm528_vm2, %v3060_v50, 0.0  ;;  %v3182_v58 = vsel %vm528_vm2, %v3181_v52, 0.0 }
0x32c7   :  { %3062 = vadd.xlane.f32.xlu0 %v3061_v33 }
0x3354   :  { %v3063_v56 = vpop.xlane.xlu0 %3062 }
0x3355   :  { %v3064_v53 = vadd.f32 %v3063_v56, %v3059_v48 }
0x3357   :  { %v3065_v57 = vadd.f32 %v3743_v37, %v3064_v53 }
0x3359   :  { %3068 = vperm.xlu1 %3621, %v3065_v57  }
0x33d8   :  { %v3069_v55 = vpop.permute.xlu1 %3068 }
0x33d9   :  { %v3071_v60 = vmul.f32 %v3744_v59, %v3069_v55 }
0x33db   :  { %v3141_v61 = vadd.f32 %v3140_v1, %v3071_v60 }
0x33dd   :  { %v3144_v11 = vadd.f32 %v3745_v6, %v3141_v61 }
0x33df   :  { %3727 = vtanh.f32 %v3144_v11  ;;  %v3225_v14 = vmul.f32 -1.442695, %v3144_v11 }
0x33e1   :  { %3729 = vpow2.f32 %v3225_v14 }
0x33e9   :  { %v3728_v13 = vpop.eup %3727 }
0x33ea   :  { %3154 = vrot.lane.b32.xlu0 %v3728_v13, %s3777_s4 }
0x33eb   :  { %v3730_v17 = vpop.eup %3729 }
0x33ec   :  { %v3148_v10 = vadd.f32 1.0, %v3730_v17 }
0x33ee   :  { %3731 = vrcp.f32 %v3148_v10  ;;  %3170 = vrot.lane.b32.xlu0 %v133_v31, %s3778_s5 }
0x33f8   :  { %v3732_v20 = vpop.eup %3731 }
0x33f9   :  { %v3152_v24 = vmul.f32 %v3732_v20, %v4215_v25 }
0x345c   :  { %v3155_v8 = vpop.permute.xlu0 %3154 }
0x345d   :  { %v3157_v22 = vmul.f32 %v3732_v20, %v3155_v8 }
0x345f   :  { %3159 = vrot.lane.b32.xlu1 %v3157_v22, %s3777_s4 }
0x3460   :  { %v3171_v23 = vpop.permute.xlu0 %3170 }
0x34d1   :  { %v3160_v39 = vpop.permute.xlu1 %3159 }
0x34d2   :  { %v3162_v18 = vadd.f32 %v3160_v39, %v3152_v24 }
0x34d4   :  { %3733 = vtanh.f32 %v3162_v18 }
0x34de   :  { %v3734_v30 = vpop.eup %3733 }
0x34df   :  { %3165 = vrot.lane.b32.xlu1 %v3734_v30, %s3777_s4 }
0x3551   :  { %v3166_v43 = vpop.permute.xlu1 %3165 }
0x3552   :  { %v3168_v29 = vmul.f32 %v3732_v20, %v3166_v43 }
0x3554   :  { %v3173_v32 = vmul.f32 %v3171_v23, %v3168_v29 }
0x3556   :  { %3175 = vrot.lane.b32.xlu1 %v3173_v32, %s3778_s5 }
0x357a   :  { %3183 = vadd.xlane.f32.xlu1 %v3182_v58 }
0x35c8   :  { %v3176_v63 = vpop.permute.xlu1 %3175 }
0x35c9   :  { %v3178_v25 = vsel %vm528_vm2, %v3176_v63, 0.0 }
0x35ca   :  { %3179 = vadd.xlane.f32.xlu0 %v3178_v25 }
0x3607   :  { %v3184_v9 = vpop.xlane.xlu1 %3183 }
0x3657   :  { %v3180_v5 = vpop.xlane.xlu0 %3179 }
0x3658   :  { %v3185_v27 = vadd.f32 %v3184_v9, %v3180_v5 }
0x365a   :  { %v3186_v34 = vadd.f32 %v3185_v27, %v135_v26 }
0x365c   :  { %3188 = vst.msk [vmem:[%s4262_s3] sm:$0xff] %vm3187_vm4, %v3186_v34 }
0x365d   :  { %3193 = vsyncpa [#allocation3], 1 }

</bundles_post_ra>
